<compile_context>
chip_gen: v7x
topology: tpu7x:2x2x1
jax: 0.10.0
libtpu: 0.0.40
codegen_flags: <defaults>
</compile_context>

<pallas_src>
import functools

import jax
import jax.numpy as jnp
from jax import lax
from jax.experimental import pallas as pl
from jax.experimental.pallas import tpu as pltpu


def _vmem_budget_bytes():
    """~75% of per-core VMEM: 48 MiB on v7x (64 MiB total), 96 MiB on v5e/v6e (128 MiB)."""
    cap = 128 * 1024 * 1024
    try:
        info = pltpu.get_tpu_info()
        cap = int(getattr(info, "vmem_capacity_bytes", cap)) or cap
    except Exception:
        pass
    return int(min((cap * 3) // 4, 112 * 1024 * 1024))


def _pick_h_tile(h, w, target_rows):
    """Largest divisor th of h with th*w <= target_rows and a legal sublane count,
    preferring >= 2 tiles per sample (grid depth for pipelining / v7x's 2 cores)."""
    legal = [d for d in range(1, h + 1)
             if h % d == 0 and (d == h or (d * w) % 8 == 0)]
    small = [d for d in legal if d * w <= target_rows]
    cands = small if small else [min(legal)]
    pick = max(cands)
    if pick == h and h > 1:
        halves = [d for d in cands if d < h]
        if halves:
            pick = max(halves)
    return pick


def _conv_stats_kernel(x_ref, w_ref, y_ref, s_ref, *, th, tw, cin, cp):
    """One (sample, H-tile) step of the phase-folded transposed convolution.

    x_ref: (1, H+2, W+2, cin)  bf16 -- full zero-padded sample (resident across tiles)
    w_ref: (9*cin, cp)         bf16 -- fused weight, rows (sh, sw, cin), cols (ph, pw, cout)
    y_ref: (1, th*tw, cp)      bf16 -- conv output tile (lane-dense, cp = pad128(4*Cout))
    s_ref: (1, 1, 2, cp)       f32  -- per-tile [sum; centered sum-of-squares]
    """
    i = pl.program_id(1)
    m = th * tw
    r0 = pl.multiple_of(i * th, th)
    # Halo window for this tile: rows [i*th, i*th + th + 2) of the padded image.
    xwin = x_ref[0, pl.ds(r0, th + 2), :, :]                 # (th+2, tw+2, cin)

    # Three sublane (+-1 W) shifts, reused by the three (cheap) leading-dim H shifts;
    # the nine pieces are concatenated along K for ONE fused matmul.
    xws = [xwin[:, 1 + sw:1 + sw + tw, :] for sw in (-1, 0, 1)]  # (th+2, tw, cin) x3
    lhs = jnp.concatenate(
        [xws[sw + 1][1 + sh:1 + sh + th] for sh in (-1, 0, 1) for sw in (-1, 0, 1)],
        axis=-1).reshape(m, 9 * cin)                         # (m, 9*cin) bf16

    acc = jnp.dot(lhs, w_ref[...], preferred_element_type=jnp.float32)  # (m, cp) f32

    # bf16 HBM intermediate; statistics come from the f32 accumulator (not a re-read
    # of y_ref), centered per tile for numerical robustness.
    y_ref[0] = acc.astype(y_ref.dtype)
    tsum = jnp.sum(acc, axis=0, keepdims=True)               # (1, cp)
    tmean = tsum * (1.0 / m)
    d = acc - tmean
    s_ref[0, 0, 0:1, :] = tsum
    s_ref[0, 0, 1:2, :] = jnp.sum(d * d, axis=0, keepdims=True)


def _norm_relu_kernel(y_ref, mr_ref, o_ref):
    """(y - mean) * rstd followed by ReLU, on the lane-dense phase-channel layout."""
    y = y_ref[0].astype(jnp.float32)                         # (m_tile, cp)
    mean = mr_ref[0, 0:1, :]
    rstd = mr_ref[0, 1:2, :]
    o_ref[0] = jnp.maximum((y - mean) * rstd, 0.0)


def unet_up_forward(x_nchw, skip_nchw, weight):
    """x: (N,Cin,H,W), skip: (N,Cout,2H,2W), weight: (Cin,Cout,4,4) -> (N,2*Cout,2H,2W)."""
    N, Cin, H, W = x_nchw.shape
    Cout = weight.shape[1]
    OH, OW = 2 * H, 2 * W
    C4 = 4 * Cout
    Cp = ((C4 + 127) // 128) * 128                           # lane-dense phase-channel width

    vmem_limit = _vmem_budget_bytes()
    target_rows = max(512, min(4096, vmem_limit // (Cp * 32)))
    th = _pick_h_tile(H, W, target_rows)
    n_tiles = H // th
    m_tile = th * W

    # NHWC, zero halo of 1 on each spatial side, bf16 operands for the MXU.
    x = jnp.transpose(x_nchw, (0, 2, 3, 1)).astype(jnp.bfloat16)
    xp = jnp.pad(x, ((0, 0), (1, 1), (1, 1), (0, 0)))        # (N, H+2, W+2, Cin)

    # Fused weight (9*Cin, Cp): rows (sh, sw, cin), cols (ph, pw, cout); zero where a
    # (shift, phase) pair has no valid ConvTranspose2d(4,2,1) tap (k = phase+1-2*shift).
    wbig = jnp.zeros((3, 3, Cin, 2, 2, Cout), jnp.float32)
    for sh in (-1, 0, 1):
        for sw in (-1, 0, 1):
            for ph in range(2):
                kh = ph + 1 - 2 * sh
                if not 0 <= kh < 4:
                    continue
                for pw in range(2):
                    kw = pw + 1 - 2 * sw
                    if not 0 <= kw < 4:
                        continue
                    wbig = wbig.at[sh + 1, sw + 1, :, ph, pw, :].set(weight[:, :, kh, kw])
    wk = wbig.reshape(9 * Cin, C4)
    if Cp > C4:
        wk = jnp.pad(wk, ((0, 0), (0, Cp - C4)))
    wk = wk.astype(jnp.bfloat16)

    cparams = pltpu.CompilerParams(
        dimension_semantics=("parallel", "parallel"),
        vmem_limit_bytes=vmem_limit,
    )

    kernel1 = functools.partial(_conv_stats_kernel, th=th, tw=W, cin=Cin, cp=Cp)
    y, stats = pl.pallas_call(
        kernel1,
        out_shape=(
            jax.ShapeDtypeStruct((N, H * W, Cp), jnp.bfloat16),
            jax.ShapeDtypeStruct((N, n_tiles, 2, Cp), jnp.float32),
        ),
        grid=(N, n_tiles),
        in_specs=[
            pl.BlockSpec((1, H + 2, W + 2, Cin), lambda n, i: (n, 0, 0, 0)),
            pl.BlockSpec((9 * Cin, Cp), lambda n, i: (0, 0)),
        ],
        out_specs=(
            pl.BlockSpec((1, m_tile, Cp), lambda n, i: (n, i, 0)),
            pl.BlockSpec((1, 1, 2, Cp), lambda n, i: (n, i, 0, 0)),
        ),
        compiler_params=cparams,
    )(xp, wk)

    # Finish the InstanceNorm statistics (tiny: N x Cout) with the parallel-variance
    # combine over (tile, phase) chunks; each chunk has m_tile elements per channel.
    s = stats[:, :, :, :C4].reshape(N, n_tiles, 2, 4, Cout)
    chunk_sum = s[:, :, 0].reshape(N, n_tiles * 4, Cout)
    chunk_m2 = s[:, :, 1].reshape(N, n_tiles * 4, Cout)
    cnt = jnp.float32(m_tile)
    total = jnp.float32(OH * OW)
    mean = chunk_sum.sum(axis=1) / total                                  # (N, Cout)
    mu_k = chunk_sum / cnt                                                # (N, K, Cout)
    m2 = chunk_m2.sum(axis=1) + cnt * ((mu_k - mean[:, None, :]) ** 2).sum(axis=1)
    rstd = lax.rsqrt(m2 / total + 1e-5)

    pad = Cp - C4
    mean4 = jnp.tile(mean, (1, 4))
    rstd4 = jnp.tile(rstd, (1, 4))
    if pad:
        mean4 = jnp.pad(mean4, ((0, 0), (0, pad)))
        rstd4 = jnp.pad(rstd4, ((0, 0), (0, pad)), constant_values=1.0)
    mr = jnp.stack([mean4, rstd4], axis=1)                                # (N, 2, Cp)

    y_act = pl.pallas_call(
        _norm_relu_kernel,
        out_shape=jax.ShapeDtypeStruct((N, H * W, Cp), jnp.float32),
        grid=(N, n_tiles),
        in_specs=[
            pl.BlockSpec((1, m_tile, Cp), lambda n, i: (n, i, 0)),
            pl.BlockSpec((1, 2, Cp), lambda n, i: (n, 0, 0)),
        ],
        out_specs=pl.BlockSpec((1, m_tile, Cp), lambda n, i: (n, i, 0)),
        compiler_params=cparams,
    )(y, mr)

    # Single phase interleave fused with the one unavoidable NHWC->NCHW relayout.
    # TODO(synk): fuse this relayout (and the concat write, via input_output_aliases)
    # into the norm kernel once Mosaic reliably lowers the required 5-D transpose;
    # kept in XLA here to guarantee a clean compile.
    y_nchw = (y_act[:, :, :C4]
              .reshape(N, H, W, 2, 2, Cout)
              .transpose(0, 5, 1, 3, 2, 4)
              .reshape(N, Cout, OH, OW))
    # TODO(synk): optional nn.Dropout (only active when dropout>0; module default 0.0).
    return jnp.concatenate([y_nchw, skip_nchw.astype(y_nchw.dtype)], axis=1)


def _reference(x, skip, w):
    # Direct scatter-add form of ConvTranspose2d, then InstanceNorm2d + ReLU + concat.
    N, Cin, H, W = x.shape
    Cout = w.shape[1]
    full = jnp.zeros((N, Cout, 2 * H + 2, 2 * W + 2), jnp.float32)
    for kh in range(4):
        for kw in range(4):
            t = jnp.einsum("nchw,co->nohw", x, w[:, :, kh, kw])
            full = full.at[:, :, kh:kh + 2 * H:2, kw:kw + 2 * W:2].add(t)
    y = full[:, :, 1:1 + 2 * H, 1:1 + 2 * W]
    mean = y.mean(axis=(2, 3), keepdims=True)
    var = ((y - mean) ** 2).mean(axis=(2, 3), keepdims=True)
    y = (y - mean) / jnp.sqrt(var + 1e-5)
    y = jnp.maximum(y, 0.0)
    return jnp.concatenate([y, skip], axis=1)


if __name__ == "__main__":
    key = jax.random.PRNGKey(0)
    k1, k2, k3 = jax.random.split(key, 3)
    N, Cin, Cout, H, W = 2, 8, 4, 16, 16

    x = jax.random.normal(k1, (N, Cin, H, W), jnp.float32)
    skip = jax.random.normal(k2, (N, Cout, 2 * H, 2 * W), jnp.float32)
    # ConvTranspose2d weight layout: (in_channels, out_channels, kH, kW)
    weight = 0.1 * jax.random.normal(k3, (Cin, Cout, 4, 4), jnp.float32)

    out = jax.jit(unet_up_forward)(x, skip, weight)
    out = jax.block_until_ready(out)

    ref = _reference(x, skip, weight)
    assert out.shape == (N, 2 * Cout, 2 * H, 2 * W), out.shape
    err = float(jnp.abs(out - ref).max())
    # bf16 MXU operands + bf16 HBM intermediate, f32 stats/normalization: the error
    # scales with |value|, so rtol carries the large elements and atol the small ones.
    assert jnp.allclose(out, ref, atol=2e-2, rtol=2e-2), err
    print("KERNEL_OK")
</pallas_src>

<mosaic_0001>
module attributes {stable_mosaic.version = 11 : i64} {
  func.func @_conv_stats_kernel(%arg0: i32, %arg1: i32, %arg2: memref<1x18x18x8xbf16, #tpu.memory_space<vmem>>, %arg3: memref<72x128xbf16, #tpu.memory_space<vmem>>, %arg4: memref<1x128x128xbf16, #tpu.memory_space<vmem>>, %arg5: memref<1x1x2x128xf32, #tpu.memory_space<vmem>>) attributes {dimension_semantics = [#tpu.dimension_semantics<parallel>, #tpu.dimension_semantics<parallel>], iteration_bounds = array<i64: 2, 2>, scalar_prefetch = 0 : i64, scratch_operands = 0 : i64, tpu.core_type = #tpu.core_type<tc>, window_params = [{transform_indices = @transform_0, window_bounds = array<i64: 1, 18, 18, 8>}, {pipeline_mode = #tpu.pipeline_mode<synchronous>, transform_indices = @transform_1, window_bounds = array<i64: 72, 128>}, {transform_indices = @transform_2, window_bounds = array<i64: 1, 128, 128>}, {transform_indices = @transform_3, window_bounds = array<i64: 1, 1, 2, 128>}]} {
    %c8_i32 = arith.constant 8 : i32
    %0 = arith.muli %arg1, %c8_i32 : i32
    %1 = tpu.assume_multiple %0, 8 : i32
    %c0 = arith.constant 0 : index
    %2 = arith.index_cast %1 : i32 to index
    %c0_0 = arith.constant 0 : index
    %c0_1 = arith.constant 0 : index
    %3 = vector.load %arg2[%c0, %2, %c0_0, %c0_1] : memref<1x18x18x8xbf16, #tpu.memory_space<vmem>>, vector<1x10x18x8xbf16>
    %4 = vector.shape_cast %3 : vector<1x10x18x8xbf16> to vector<10x18x8xbf16>
    %5 = vector.extract_strided_slice %4 {offsets = [0, 0, 0], sizes = [10, 16, 8], strides = [1, 1, 1]} : vector<10x18x8xbf16> to vector<10x16x8xbf16>
    %6 = vector.extract_strided_slice %4 {offsets = [0, 1, 0], sizes = [10, 16, 8], strides = [1, 1, 1]} : vector<10x18x8xbf16> to vector<10x16x8xbf16>
    %7 = vector.extract_strided_slice %4 {offsets = [0, 2, 0], sizes = [10, 16, 8], strides = [1, 1, 1]} : vector<10x18x8xbf16> to vector<10x16x8xbf16>
    %8 = vector.extract_strided_slice %5 {offsets = [0, 0, 0], sizes = [8, 16, 8], strides = [1, 1, 1]} : vector<10x16x8xbf16> to vector<8x16x8xbf16>
    %9 = vector.extract_strided_slice %6 {offsets = [0, 0, 0], sizes = [8, 16, 8], strides = [1, 1, 1]} : vector<10x16x8xbf16> to vector<8x16x8xbf16>
    %10 = vector.extract_strided_slice %7 {offsets = [0, 0, 0], sizes = [8, 16, 8], strides = [1, 1, 1]} : vector<10x16x8xbf16> to vector<8x16x8xbf16>
    %11 = vector.extract_strided_slice %5 {offsets = [1, 0, 0], sizes = [8, 16, 8], strides = [1, 1, 1]} : vector<10x16x8xbf16> to vector<8x16x8xbf16>
    %12 = vector.extract_strided_slice %6 {offsets = [1, 0, 0], sizes = [8, 16, 8], strides = [1, 1, 1]} : vector<10x16x8xbf16> to vector<8x16x8xbf16>
    %13 = vector.extract_strided_slice %7 {offsets = [1, 0, 0], sizes = [8, 16, 8], strides = [1, 1, 1]} : vector<10x16x8xbf16> to vector<8x16x8xbf16>
    %14 = vector.extract_strided_slice %5 {offsets = [2, 0, 0], sizes = [8, 16, 8], strides = [1, 1, 1]} : vector<10x16x8xbf16> to vector<8x16x8xbf16>
    %15 = vector.extract_strided_slice %6 {offsets = [2, 0, 0], sizes = [8, 16, 8], strides = [1, 1, 1]} : vector<10x16x8xbf16> to vector<8x16x8xbf16>
    %16 = vector.extract_strided_slice %7 {offsets = [2, 0, 0], sizes = [8, 16, 8], strides = [1, 1, 1]} : vector<10x16x8xbf16> to vector<8x16x8xbf16>
    %17 = tpu.concatenate %8, %9, %10, %11, %12, %13, %14, %15, %16 in 2 : vector<8x16x8xbf16>, vector<8x16x8xbf16>, vector<8x16x8xbf16>, vector<8x16x8xbf16>, vector<8x16x8xbf16>, vector<8x16x8xbf16>, vector<8x16x8xbf16>, vector<8x16x8xbf16>, vector<8x16x8xbf16> -> vector<8x16x72xbf16>
    %18 = vector.shape_cast %17 : vector<8x16x72xbf16> to vector<128x72xbf16>
    %c0_2 = arith.constant 0 : index
    %c0_3 = arith.constant 0 : index
    %19 = vector.load %arg3[%c0_2, %c0_3] : memref<72x128xbf16, #tpu.memory_space<vmem>>, vector<72x128xbf16>
    %cst = arith.constant dense<0.000000e+00> : vector<128x128xf32>
    %20 = tpu.matmul %18, %19, %cst {dimension_numbers = #tpu.dot_dimension_numbers<[1], [0], [0], [1], [0, 0, 1, 1], [], []>} : vector<128x72xbf16>, vector<72x128xbf16>, vector<128x128xf32> -> vector<128x128xf32>
    %21 = arith.truncf %20 : vector<128x128xf32> to vector<128x128xbf16>
    %c0_4 = arith.constant 0 : index
    %c0_5 = arith.constant 0 : index
    %c0_6 = arith.constant 0 : index
    %22 = vector.load %arg4[%c0_4, %c0_5, %c0_6] : memref<1x128x128xbf16, #tpu.memory_space<vmem>>, vector<1x128x128xbf16>
    %23 = vector.shape_cast %22 : vector<1x128x128xbf16> to vector<128x128xbf16>
    %24 = vector.shape_cast %21 : vector<128x128xbf16> to vector<1x128x128xbf16>
    tpu.vector_store %arg4[%c0_4, %c0_5, %c0_6], %24 {strides = array<i32>} : memref<1x128x128xbf16, #tpu.memory_space<vmem>>, vector<1x128x128xbf16>,
    %cst_7 = arith.constant dense<0.000000e+00> : vector<128xf32>
    %25 = vector.multi_reduction <add>, %20, %cst_7 [0] : vector<128x128xf32> to vector<128xf32>
    %26 = vector.shape_cast %25 : vector<128xf32> to vector<1x128xf32>
    %cst_8 = arith.constant 7.812500e-03 : f32
    %27 = vector.broadcast %cst_8 : f32 to vector<1x128xf32>
    %28 = arith.mulf %26, %27 : vector<1x128xf32>
    %29 = vector.broadcast %28 : vector<1x128xf32> to vector<128x128xf32>
    %30 = arith.subf %20, %29 : vector<128x128xf32>
    %c0_9 = arith.constant 0 : index
    %c0_10 = arith.constant 0 : index
    %c0_11 = arith.constant 0 : index
    %c0_12 = arith.constant 0 : index
    %31 = vector.load %arg5[%c0_9, %c0_10, %c0_11, %c0_12] : memref<1x1x2x128xf32, #tpu.memory_space<vmem>>, vector<1x1x1x128xf32>
    %32 = vector.shape_cast %31 : vector<1x1x1x128xf32> to vector<1x128xf32>
    %33 = vector.shape_cast %26 : vector<1x128xf32> to vector<1x1x1x128xf32>
    tpu.vector_store %arg5[%c0_9, %c0_10, %c0_11, %c0_12], %33 {strides = array<i32>} : memref<1x1x2x128xf32, #tpu.memory_space<vmem>>, vector<1x1x1x128xf32>,
    %34 = arith.mulf %30, %30 : vector<128x128xf32>
    %cst_13 = arith.constant dense<0.000000e+00> : vector<128xf32>
    %35 = vector.multi_reduction <add>, %34, %cst_13 [0] : vector<128x128xf32> to vector<128xf32>
    %36 = vector.shape_cast %35 : vector<128xf32> to vector<1x128xf32>
    %c0_14 = arith.constant 0 : index
    %c0_15 = arith.constant 0 : index
    %c1 = arith.constant 1 : index
    %c0_16 = arith.constant 0 : index
    %37 = vector.load %arg5[%c0_14, %c0_15, %c1, %c0_16] : memref<1x1x2x128xf32, #tpu.memory_space<vmem>>, vector<1x1x1x128xf32>
    %38 = vector.shape_cast %37 : vector<1x1x1x128xf32> to vector<1x128xf32>
    %39 = vector.shape_cast %36 : vector<1x128xf32> to vector<1x1x1x128xf32>
    tpu.vector_store %arg5[%c0_14, %c0_15, %c1, %c0_16], %39 {strides = array<i32>} : memref<1x1x2x128xf32, #tpu.memory_space<vmem>>, vector<1x1x1x128xf32>,
    return
  }
  func.func @transform_0(%arg0: i32, %arg1: i32) -> (i32, i32, i32, i32) {
    %c0_i32 = arith.constant 0 : i32
    %c0_i32_0 = arith.constant 0 : i32
    %c0_i32_1 = arith.constant 0 : i32
    %c0_i32_2 = arith.constant 0 : i32
    return %arg0, %c0_i32, %c0_i32_0, %c0_i32_1 : i32, i32, i32, i32
  }
  func.func @transform_1(%arg0: i32, %arg1: i32) -> (i32, i32) {
    %c0_i32 = arith.constant 0 : i32
    %c0_i32_0 = arith.constant 0 : i32
    %c0_i32_1 = arith.constant 0 : i32
    return %c0_i32, %c0_i32_0 : i32, i32
  }
  func.func @transform_2(%arg0: i32, %arg1: i32) -> (i32, i32, i32) {
    %c0_i32 = arith.constant 0 : i32
    %c0_i32_0 = arith.constant 0 : i32
    return %arg0, %arg1, %c0_i32 : i32, i32, i32
  }
  func.func @transform_3(%arg0: i32, %arg1: i32) -> (i32, i32, i32, i32) {
    %c0_i32 = arith.constant 0 : i32
    %c0_i32_0 = arith.constant 0 : i32
    %c0_i32_1 = arith.constant 0 : i32
    return %arg0, %arg1, %c0_i32, %c0_i32_0 : i32, i32, i32, i32
  }
}

module attributes {stable_mosaic.version = 11 : i64} {
  func.func @_norm_relu_kernel(%arg0: i32, %arg1: i32, %arg2: memref<1x128x128xbf16, #tpu.memory_space<vmem>>, %arg3: memref<1x2x128xf32, #tpu.memory_space<vmem>>, %arg4: memref<1x128x128xf32, #tpu.memory_space<vmem>>) attributes {dimension_semantics = [#tpu.dimension_semantics<parallel>, #tpu.dimension_semantics<parallel>], iteration_bounds = array<i64: 2, 2>, scalar_prefetch = 0 : i64, scratch_operands = 0 : i64, tpu.core_type = #tpu.core_type<tc>, window_params = [{transform_indices = @transform_0, window_bounds = array<i64: 1, 128, 128>}, {transform_indices = @transform_1, window_bounds = array<i64: 1, 2, 128>}, {transform_indices = @transform_2, window_bounds = array<i64: 1, 128, 128>}]} {
    %c0 = arith.constant 0 : index
    %c0_0 = arith.constant 0 : index
    %c0_1 = arith.constant 0 : index
    %0 = vector.load %arg2[%c0, %c0_0, %c0_1] : memref<1x128x128xbf16, #tpu.memory_space<vmem>>, vector<1x128x128xbf16>
    %1 = vector.shape_cast %0 : vector<1x128x128xbf16> to vector<128x128xbf16>
    %2 = arith.extf %1 : vector<128x128xbf16> to vector<128x128xf32>
    %c0_2 = arith.constant 0 : index
    %c0_3 = arith.constant 0 : index
    %c0_4 = arith.constant 0 : index
    %3 = vector.load %arg3[%c0_2, %c0_3, %c0_4] : memref<1x2x128xf32, #tpu.memory_space<vmem>>, vector<1x1x128xf32>
    %4 = vector.shape_cast %3 : vector<1x1x128xf32> to vector<1x128xf32>
    %c0_5 = arith.constant 0 : index
    %c1 = arith.constant 1 : index
    %c0_6 = arith.constant 0 : index
    %5 = vector.load %arg3[%c0_5, %c1, %c0_6] : memref<1x2x128xf32, #tpu.memory_space<vmem>>, vector<1x1x128xf32>
    %6 = vector.shape_cast %5 : vector<1x1x128xf32> to vector<1x128xf32>
    %7 = vector.broadcast %4 : vector<1x128xf32> to vector<128x128xf32>
    %8 = arith.subf %2, %7 : vector<128x128xf32>
    %9 = vector.broadcast %6 : vector<1x128xf32> to vector<128x128xf32>
    %10 = arith.mulf %8, %9 : vector<128x128xf32>
    %cst = arith.constant 0.000000e+00 : f32
    %11 = vector.broadcast %cst : f32 to vector<128x128xf32>
    %12 = arith.maximumf %10, %11 : vector<128x128xf32>
    %c0_7 = arith.constant 0 : index
    %c0_8 = arith.constant 0 : index
    %c0_9 = arith.constant 0 : index
    %13 = vector.load %arg4[%c0_7, %c0_8, %c0_9] : memref<1x128x128xf32, #tpu.memory_space<vmem>>, vector<1x128x128xf32>
    %14 = vector.shape_cast %13 : vector<1x128x128xf32> to vector<128x128xf32>
    %15 = vector.shape_cast %12 : vector<128x128xf32> to vector<1x128x128xf32>
    tpu.vector_store %arg4[%c0_7, %c0_8, %c0_9], %15 {strides = array<i32>} : memref<1x128x128xf32, #tpu.memory_space<vmem>>, vector<1x128x128xf32>,
    return
  }
  func.func @transform_0(%arg0: i32, %arg1: i32) -> (i32, i32, i32) {
    %c0_i32 = arith.constant 0 : i32
    %c0_i32_0 = arith.constant 0 : i32
    return %arg0, %arg1, %c0_i32 : i32, i32, i32
  }
  func.func @transform_1(%arg0: i32, %arg1: i32) -> (i32, i32, i32) {
    %c0_i32 = arith.constant 0 : i32
    %c0_i32_0 = arith.constant 0 : i32
    %c0_i32_1 = arith.constant 0 : i32
    return %arg0, %c0_i32, %c0_i32_0 : i32, i32, i32
  }
  func.func @transform_2(%arg0: i32, %arg1: i32) -> (i32, i32, i32) {
    %c0_i32 = arith.constant 0 : i32
    %c0_i32_0 = arith.constant 0 : i32
    return %arg0, %arg1, %c0_i32 : i32, i32, i32
  }
}

</mosaic_0001>

<bundles_post_ra>
// kernel: tile.19
= control target key start
LH: loop header
LB: loop body
LE: loop exit
PB: predicated region body
PF: predicated region fallthrough
CT: control target
= control target key end

     0   :  { %s29_s10 = smov 3  ;;  %s10_s11 = smov 3  ;;  %vm12_vm0 = vcmask 31744   ;;  %vm19_vm1 = vcmask 130144   ;;  %vm26_vm2 = vcmask 97344   ;;  %vm33_vm3 = vcmask 64544   ;;  %s67_s0 = inlined_call_operand.vmem [shape: f32[2,4,4], index: 0, kind: input, shape index: {}]   ;;  %s68_s1 = inlined_call_operand.vmem [shape: f32[2,16], index: 1, kind: output, shape index: {}]  }
   0x1   :  { %v41_v0 = vld [vmem:[%s67_s0 + $0x4] sm:$0xf]  ;;  %v8_v1 = vld [vmem:[%s67_s0] sm:$0xf]  ;;  %s15_s0 = smov 3  ;;  %s22_s12 = smov 3 }
   0x2   :  { %7 = vst [vmem:[#allocation1 + $0x8] sm:$0xf] %v41_v0  ;;  %9 = vst [vmem:[#allocation1] sm:$0xf] %v8_v1  ;;  %s45_s13 = smov 12   ;;  %s46_s14 = smov 4  }
   0x3   :  { %s47_s15 = smov 8  }
   0x9   :  { %v16_v2 = vld [vmem:[#allocation1 + $0x3] ss:$8 sm:%s15_s0]   ;;  %v30_v3 = vld [vmem:[#allocation1 + $0x1] ss:$8 sm:%s29_s10]   ;;  %v11_v4 = vld [vmem:[#allocation1] ss:$8 sm:%s10_s11]  }
   0xa   :  { %17 = vrot.lane.b32.xlu0 %v16_v2, %s45_s13  ;;  %31 = vrot.lane.b32.xlu1 %v30_v3, %s46_s14  ;;  %v23_v5 = vld [vmem:[#allocation1 + $0x2] ss:$8 sm:%s22_s12]   ;;  %13 = vst.msk [vmem:[#allocation0] sm:$0x3] %vm12_vm0, %v11_v4  }
   0xe   :  { %24 = vrot.lane.b32.xlu0 %v23_v5, %s47_s15 }
  0x7c   :  { %v18_v6 = vpop.permute.xlu0 %17   ;;  %v32_v7 = vpop.permute.xlu1 %31  }
  0x7d   :  { %20 = vst.msk [vmem:[#allocation0] sm:$0x3] %vm19_vm1, %v18_v6  }
  0x80   :  { %v25_v8 = vpop.permute.xlu0 %24  }
  0x81   :  { %27 = vst.msk [vmem:[#allocation0] sm:$0x3] %vm26_vm2, %v25_v8  }
  0x82   :  { %34 = vst.msk [vmem:[#allocation0] sm:$0x3] %vm33_vm3, %v32_v7  }
  0x89   :  { %v38_v9 = vld [vmem:[#allocation0] sm:$0x3] }
  0x8a   :  { %40 = vst [vmem:[%s68_s1] sm:$0x3] %v38_v9 }

// kernel: unet_up_forward.2
= control target key start
LH: loop header
LB: loop body
LE: loop exit
PB: predicated region body
PF: predicated region fallthrough
CT: control target
= control target key end

     0   :  { %s2547_s0 = inlined_call_operand.hbm [shape: bf16[2,18,18,8], index: 0, kind: input, shape index: {}]   ;;  %s2548_s1 = inlined_call_operand.hbm [shape: bf16[72,128], index: 1, kind: input, shape index: {}]   ;;  %s2549_s2 = inlined_call_operand.hbm [shape: bf16[2,256,128], index: 2, kind: output, shape index: {0}]   ;;  %s2550_s3 = inlined_call_operand.hbm [shape: f32[2,2,2,128], index: 3, kind: output, shape index: {1}]  }
   0x1   :  { %2563 = sst [smem:[#allocation19_spill]] %s2548_s1 }
   0x2   :  { %9 = vsyncpa [#allocation3], 0 }
   0x3   :  { %11 = vsyncpa [#allocation3 + $0x1], 0 }
   0x4   :  { %12 = vsyncpa [#allocation6], 0 }
   0x5   :  { %13 = vsyncpa [#allocation4], 0 }
   0x6   :  { %15 = vsyncpa [#allocation4 + $0x1], 0 }
   0x7   :  { %16 = vsyncpa [#allocation9], 0 }
   0x8   :  { %18 = vsyncpa [#allocation9 + $0x1], 0  ;;  %s1839_s12 = smov 0   ;;  %s1841_s13 = smov 0  }
   0x9   :  { %s1843_s14 = smov 0   ;;  %s1845_s15 = smov 0  }
   0xa   :  { %s1847_s16 = smov 0   ;;  %s1849_s17 = smov 0  }
   0xb   :  { %s1851_s18 = smov 0   ;;  %s1853_s19 = smov 0  }
   0xc   :  { %s1855_s20 = smov 0   ;;  %s1857_s21 = smov 0  }
   0xd   :  { %s1859_s22 = smov 0  }
   0xe LB: > { %2564 = sst [smem:[#allocation14_spill]] %s1762_s12  ;;  %s1243_s23 = sadd.s32 4294967295, %s1802_s22   ;;  %s1802_s22 = sphi %s1859_s22, %s24_s22   ;;  %s1798_s21 = sphi %s1857_s21, %s2597_s21   ;;  %s1794_s20 = sphi %s1855_s20, %s2588_s20   ;;  %s1790_s19 = sphi %s1853_s19, %s2596_s19   ;;  %s1786_s18 = sphi %s1851_s18, %s2587_s18   ;;  %s1782_s17 = sphi %s1849_s17, %s2595_s17   ;;  %s1778_s16 = sphi %s1847_s16, %s2594_s16   ;;  %s1774_s15 = sphi %s1845_s15, %s2593_s15   ;;  %s1770_s14 = sphi %s1843_s14, %s2592_s14   ;;  %s1766_s13 = sphi %s1841_s13, %s2591_s13   ;;  %s1762_s12 = sphi %s1839_s12, %s2590_s12  }
   0xf   : > { %2565 = sst [smem:[#allocation15_spill]] %s1794_s20  ;;  %s1244_s24 = sadd.s32 4294967294, %s1802_s22  }
  0x10   : > { %p56_p0 = scmp.ne.s32.totalorder %s1778_s16, %s1774_s15  ;;  %p1895_p1 = scmp.eq.s32.totalorder %s1243_s23, 0 }
  0x11   : > { %s92_s26 = sadd.s32 1, %s1770_s14  ;;  %p102_p2 = scmp.ne.s32.totalorder %s1770_s14, %s1766_s13 }
  0x12   : > { %s2566_s25 = scalar_select %p1895_p1, 1, 0 }
  0x13   : > { %p1904_p3 = por %p1895_p1, %p56_p0  ;;  %p103_p4 = scmp.eq.s32.totalorder %s1243_s23, 3 }
  0x14   : > { %p108_p5 = scmp.ne.s32.totalorder %s1766_s13, %s1762_s12  ;;  %p109_p6 = scmp.eq.s32.totalorder %s1244_s24, 3 }
  0x15   : > { %s2567_s27 = scalar_select %p1904_p3, 1, 0 }
  0x16   : > { %p1910_p7 = por %p103_p4, %p102_p2  ;;  %p1245_p8 = scmp.ge.s32.totalorder %s1802_s22, 1 }
  0x17   : > { %p1915_p9 = por %p109_p6, %p108_p5  ;;  %p144_p10 = scmp.lt.s32.totalorder %s1802_s22, 5 }
  0x18   : > { %s2568_s28 = scalar_select %p1910_p7, 1, 0 }
  0x19   : > { %s2569_s29 = scalar_select %p1915_p9, 1, 0 }
  0x1a   : > { %p1920_p11 = pnand %p1245_p8, %p144_p10  ;;  %s1804_s4 = smov [#allocation5]  }
  0x1b   : > { %2570 = sst [smem:[#allocation16_spill]] %s2569_s29  ;;  %s156_s5 = sshll.u32 %s1804_s4, 4  ;;  %s157_s5 = int_to_ptr.vmem [resolvable:$true] %s156_s5 }
  0x1c   : > { %s2571_s30 = scalar_select %p1920_p11, 1, 0 }
  0x1d   : > { %p1442_p12 = pneg %p1920_p11  ;;  %s2573_s1 = sld [smem:[#allocation19_spill]] }
  0x1f   : > { %p1928_p13 = pnand %p1442_p12, %p1895_p1 }
  0x21   : > { %p1588_p2 = pneg %p1928_p13 }
  0x23   : > { %s1586_s9 = scalar_lea.hbm %s2573_s1, 576 }
  0x24   : > { %p1587_p0 = scmp.ne.s32.totalorder %s2573_s1, %s1586_s9  ;;  %p1593_p6 = scmp.lt.u32.totalorder %s1586_s9, %s2573_s1 }
  0x26   : > { %p1589_p4 = pnand %p1588_p2, %p1587_p0 }
  0x28   : > { %p1590_p5 = pneg %p1589_p4 }
  0x2a   : > { %p1595_p8 = pnand %p1593_p6, %p1590_p5 }
  0x2c   : > { %1598 = shalt.err (!%p1595_p8)
}
  0x2d   : > { %s1599_s24 = scalar_lea.vmem %s157_s5, 576  ;;  %p1607_p7 = scmp.lt.s32.totalorder %s157_s5, %s157_s5 }
  0x2e   : > { %p1600_p10 = scmp.ne.s32.totalorder %s157_s5, %s1599_s24  ;;  %p1608_p1 = scmp.lt.s32.totalorder %s1599_s24, %s1599_s24 }
  0x30   : > { %p1602_p12 = pnand %p1600_p10, %p1588_p2  ;;  %p1609_p3 = por %p1608_p1, %p1607_p7 }
  0x32   : > { %p1603_p9 = pneg %p1602_p12 }
  0x34   : > { %p1610_p11 = pnand %p1609_p3, %p1603_p9 }
  0x36   : > { %1613 = shalt.err (!%p1610_p11)
}
  0x37   : > { %s2556_s4 = smov 64   ;;  %s2557_s7 = smov 4  }
  0x38   : > { %1445 = dma.hbm_to_vmem [thread:$0]  (!%p1928_p13), %s2573_s1, 576, %s157_s5, [#allocation6], %s2556_s4, %s2556_s4, %s2557_s7  }
  0x39   : > { %s33_s10 = sadd.s32 1, %s1794_s20  ;;  %s36_s11 = sadd.s32 1, %s1798_s21 }
  0x3a   : > { %p34_p1 = scmp.ge.s32.totalorder %s33_s10, 2  ;;  %s43_s15 = sadd.s32 1, %s1782_s17 }
  0x3b   : > { %p50_p3 = scmp.ne.s32.totalorder %s1782_s17, %s1778_s16  ;;  %p51_p7 = scmp.eq.s32.totalorder %s1802_s22, 0 }
  0x3c   : > { %s2599_s10 = smov (%p34_p1, %s33_s10), 0  ;;  %s2601_s11 = smov (!%p34_p1, %s36_s11), %s1798_s21 }
  0x3d   : > { %2574 = sst [smem:[#allocation17_spill]] %s2599_s10  ;;  %s88_s6 = ssub.s32 %s1794_s20, %s2599_s10 }
  0x3e   : > { %p38_p9 = scmp.ge.s32.totalorder %s2601_s11, 2  ;;  %p1458_p11 = scmp.lt.s32.totalorder %s1802_s22, 4 }
  0x3f   : > { %p1963_p13 = por %p51_p7, %p50_p3  ;;  %s170_s23 = sand.u32 1, %s1782_s17  }
  0x40   : > { %s2603_s11 = smov (%p38_p9, %s2601_s11), 0  ;;  %s1429_s24 = smul.u32 216, %s170_s23 }
  0x41   : > { %2576 = sst [smem:[#allocation18_spill]] %s2603_s11  ;;  %s40_s8 = ssub.s32 %s1798_s21, %s2603_s11 }
  0x42   : > { %s1430_s9 = smul.u32 3456, %s1798_s21  ;;  %p41_p0 = scmp.eq.s32.totalorder %s40_s8, 0 }
  0x43   : > { %s89_s4 = sor.u32 %s88_s6, %s40_s8  ;;  %s174_s12 = scalar_lea.vmem [#allocation2], %s1429_s24 }
  0x44   : > { %p90_p2 = scmp.eq.s32.totalorder %s89_s4, 0  ;;  %s1984_s29 = scalar_lea.hbm %s2547_s0, %s1430_s9 }
  0x45   : > { %s1974_s7 = scalar_select %p41_p0, %s1782_s17, %s43_s15  }
  0x46   : > { %s1979_s1 = scalar_select %p90_p2, %s1770_s14, %s92_s26  }
  0x47   : > { %s181_s11 = sshll.u32 %s174_s12, 4  ;;  %p1992_p4 = pnand %p1458_p11, %p1963_p13  ;;  %s1986_s11 = int_to_ptr.vmem [resolvable:$true] %s181_s11 }
  0x48   : > { %s1996_s26 = scalar_lea.sflag [#allocation3], %s170_s23  ;;  %s1614_s20 = scalar_lea.hbm %s1984_s29, 3456 }
  0x49   : > { %p1615_p5 = scmp.ne.s32.totalorder %s1984_s29, %s1614_s20  ;;  %p1616_p6 = pneg %p1992_p4 }
  0x4a   : > { %s1619_s15 = scalar_lea.hbm %s2547_s0, 6912  ;;  %p1620_p12 = scmp.lt.u32.totalorder %s1984_s29, %s2547_s0 }
  0x4b   : > { %p1617_p8 = pnand %p1616_p6, %p1615_p5  ;;  %p1621_p1 = scmp.lt.u32.totalorder %s1619_s15, %s1614_s20 }
  0x4c   : > { %p1623_p7 = scmp.lt.u32.totalorder %s1614_s20, %s1984_s29 }
  0x4d   : > { %p1618_p10 = pneg %p1617_p8  ;;  %p1622_p3 = por %p1621_p1, %p1620_p12 }
  0x4f   : > { %p1624_p9 = por %p1623_p7, %p1622_p3 }
  0x51   : > { %p1625_p11 = pnand %p1624_p9, %p1618_p10 }
  0x53   : > { %1628 = shalt.err (!%p1625_p11)
}
  0x54   : > { %s1629_s23 = scalar_lea.vmem %s1986_s11, 3456  ;;  %s1807_s24 = smov [#allocation2]  }
  0x55   : > { %p1630_p13 = scmp.ne.s32.totalorder %s1986_s11, %s1629_s23  ;;  %s1634_s8 = sshll.u32 %s1807_s24, 4  ;;  %s1635_s8 = int_to_ptr.vmem [resolvable:$false] %s1634_s8 }
  0x56   : > { %s1636_s9 = scalar_lea.vmem %s1635_s8, 6912  ;;  %p1637_p5 = scmp.lt.s32.totalorder %s1986_s11, %s1635_s8 }
  0x57   : > { %p1632_p0 = pnand %p1630_p13, %p1616_p6  ;;  %p1638_p8 = scmp.lt.s32.totalorder %s1636_s9, %s1629_s23 }
  0x59   : > { %p1633_p2 = pneg %p1632_p0  ;;  %p1639_p12 = por %p1638_p8, %p1637_p5 }
  0x5b   : > { %p1640_p1 = pnand %p1639_p12, %p1633_p2 }
  0x5d   : > { %1643 = shalt.err (!%p1640_p1)
}
  0x5e   : > { %s2578_s20 = smov 4   ;;  %s2579_s12 = smov 64  }
  0x5f   : > { %1449 = dma.hbm_to_vmem [thread:$0]  (!%p1992_p4), %s1984_s29, 3456, %s1986_s11, %s1996_s26, %s2579_s12, %s2579_s12, %s2578_s20  }
  0x60   : > { %p2580_p6 = scmp.ne.s32.totalorder %s2571_s30, 0 }
  0x61   : > { %s195_s10 = sand.u32 (!%p2580_p6), 1, %s1778_s16   ;;  %p2581_p10 = scmp.ne.s32.totalorder (!%p2580_p6), %s2567_s27, 0 }
  0x62   : > { %193 = sbr.rel (%p2580_p6) target bundleno = 662 (0x296), region = 28  ;;  %s196_s6 = scalar_lea.sflag (!%p2580_p6), [#allocation3], %s195_s10 }
  0x63   : > { %s1431_s15 = smul.u32 (!%p2580_p6), 216, %s195_s10 }
  0x65   : > { %s199_s5 = scalar_lea.vmem (!%p2580_p6), [#allocation2], %s1431_s15 }
  0x69   : > { %1745 = dma.done.wait (%p2581_p10), %s196_s6, 3456  }
  0x6a   : > { %1747 = vsyncadd (%p2581_p10), %s196_s6, 4294963840  ;;  %p2582_p3 = scmp.ne.s32.totalorder %s2566_s25, 0 }
  0x6c   : > { %1749 = dma.done.wait (%p2582_p3), [#allocation6], 576  }
  0x6d   : > { %1751 = vsyncadd (%p2582_p3), [#allocation6], 4294966720  ;;  %s1314_s29 = smul.u32 96, %s1786_s18  ;;  %vm444_vm0 = vcmask 1046528   ;;  %vm331_vm1 = vsmask.f32 7424 }
  0x6e   : > { %s1808_s27 = smov 24   ;;  %s1809_s25 = smov 40   ;;  %vm816_vm2 = vcmask 1043456   ;;  %vm627_vm3 = vcmask 64512   ;;  %vm644_vm4 = vcmask 130048   ;;  %vm661_vm5 = vcmask 195584  }
  0x6f   : > { %s2039_s30 = scalar_lea.vmem %s199_s5, %s1314_s29 [#allocation2]  ;;  %s1810_s11 = smov 16   ;;  %vm678_vm6 = vcmask 261120   ;;  %vm695_vm7 = vcmask 326656   ;;  %vm712_vm8 = vcmask 392192   ;;  %vm729_vm9 = vcmask 457728  }
  0x70   : > { %v2042_v0 = vld [vmem:[%s2039_s30 + $0x18] sm:$0xff]   ;;  %v2045_v1 = vld [vmem:[%s2039_s30 + $0xc] sm:$0xff]   ;;  %v1563_v2 = vld [vmem:[%s2039_s30 + $0x14] ss:$0 sps:$4 sm:$0x11]   ;;  %s1811_s4 = smov 8  }
  0x71   : > { %492 = vrot.lane.b32.xlu1 %v2042_v0, %s1808_s27  ;;  %v2051_v3 = vld [vmem:[%s2039_s30] sm:$0xff]   ;;  %490 = vrot.lane.b32.xlu0 %v2045_v1, %s1808_s27  ;;  %v448_v4 = vrot.slane %v2045_v1, 1  ;;  %v449_v5 = vrot.slane %v1563_v2, 1  ;;  %v1565_v6 = vld [vmem:[%s2039_s30 + $0x8] ss:$0 sps:$4 sm:$0x11]  }
  0x72   : > { %v445_v7 = vrot.slane %v2051_v3, 1  ;;  %v333_v8 = vshrl.u32 %v2051_v3, 16  ;;  %v335_v9 = vshll.u32 %v2051_v3, 16  ;;  %v345_v10 = vshrl.u32 %v2045_v1, 16  ;;  %v2068_v22 = vld [vmem:[%s2039_s30 + $0x24] sm:$0xff]   ;;  %s1812_s26 = smov 32  }
  0x73   : > { %v450_v11 = vsel %vm444_vm0, %v448_v4, %v449_v5  ;;  %v446_v12 = vrot.slane %v1565_v6, 1  ;;  %v340_v13 = vshll.u32 %v1565_v6, 16  ;;  %v1566_v14 = vld [vmem:[%s2039_s30 + $0x20] ss:$0 sps:$4 sm:$0x11]   ;;  %v347_v15 = vshll.u32 %v2045_v1, 16 }
  0x74   : > { %v337_v16 = vrot.slane %v335_v9, 1  ;;  %v352_v17 = vshll.u32 %v1563_v2, 16  ;;  %v359_v18 = vshll.u32 %v2042_v0, 16  ;;  %v451_v24 = vrot.slane %v2042_v0, 1  ;;  %v2085_v38 = vld [vmem:[%s2039_s30 + $0x48] sm:$0xff]   ;;  %v2103_v53 = vld [vmem:[%s2039_s30 + $0x54] sm:$0xff]  }
  0x75   : > { %540 = vrot.lane.b32.xlu0 %v450_v11, %s1809_s25  ;;  %v447_v19 = vsel %vm444_vm0, %v445_v7, %v446_v12  ;;  %v342_v20 = vrot.slane %v340_v13, 1  ;;  %v349_v21 = vrot.slane %v347_v15, 1  ;;  %v357_v26 = vshrl.u32 %v2042_v0, 16  ;;  %v2076_v32 = vld [vmem:[%s2039_s30 + $0x2c] ss:$0 sps:$4 sm:$0x11]  }
  0x76   : > { %469 = vrot.lane.b32.xlu1 %v447_v19, %s1810_s11  ;;  %v338_v23 = vor.u32 %v337_v16, %v333_v8  ;;  %v354_v25 = vrot.slane %v352_v17, 1  ;;  %v452_v27 = vrot.slane %v1566_v14, 1  ;;  %v361_v29 = vrot.slane %v359_v18, 1  ;;  %v1574_v45 = vld [vmem:[%s2039_s30 + $0x50] ss:$0 sps:$4 sm:$0x11]  }
  0x77   : > { %v350_v28 = vor.u32 %v349_v21, %v345_v10  ;;  %v364_v30 = vshll.u32 %v1566_v14, 16  ;;  %v371_v33 = vshll.u32 %v2068_v22, 16  ;;  %v369_v39 = vshrl.u32 %v2068_v22, 16  ;;  %v1576_v55 = vld [vmem:[%s2039_s30 + $0x5c] ss:$0 sps:$4 sm:$0x11]  }
  0x78   : > { %v343_v31 = vsel %vm331_vm1, %v338_v23, %v342_v20  ;;  %v2082_v35 = vsel %vm444_vm0, %v451_v24, %v452_v27  ;;  %v362_v36 = vor.u32 %v361_v29, %v357_v26  ;;  %v376_v41 = vshll.u32 %v2076_v32, 16  ;;  %v2113_v59 = vld [vmem:[%s2039_s30 + $0x60] sm:$0xff]   ;;  %v2116_v60 = vld [vmem:[%s2039_s30 + $0x6c] sm:$0xff]   ;;  %s1813_s23 = smov 48   ;;  %v1582_v14 = vld [vmem:[#allocation5 + $0x8] sm:$0xff]   ;;  %s1814_s24 = smov 56  }
  0x79   : > { %428 = vrot.lane.b32.xlu0 %v343_v31, %s1811_s4  ;;  %v355_v34 = vsel %vm331_vm1, %v350_v28, %v354_v25  ;;  %v366_v37 = vrot.slane %v364_v30, 1  ;;  %v373_v40 = vrot.slane %v371_v33, 1  ;;  %v454_v43 = vrot.slane %v2068_v22, 1  ;;  %v1581_v4 = vld [vmem:[#allocation5] sm:$0xff]   ;;  %v1583_v19 = vld [vmem:[#allocation5 + $0x10] sm:$0xff]   ;;  %s1815_s8 = smov 64  }
  0x7a   : > { %471 = vrot.lane.b32.xlu1 %v450_v11, %s1810_s11  ;;  %v455_v44 = vrot.slane %v2076_v32, 1  ;;  %v405_v46 = vshrl.u32 %v2085_v38, 16  ;;  %v407_v47 = vshll.u32 %v2085_v38, 16  ;;  %v463_v48 = vrot.slane %v2085_v38, 1  ;;  %1391 = vmatprep.subr.bf16.mxu0 %v1581_v4  ;;  %v2152_v33 = vld [vmem:[%s2039_s30 + $0x30] sm:$0xff]   ;;  %s2349_s9 = sand.u32 1, %s1766_s13  }
  0x7b   : > { %v2093_v42 = vsel %vm331_vm1, %v362_v36, %v366_v37  ;;  %v374_v49 = vor.u32 %v373_v40, %v369_v39  ;;  %v378_v50 = vrot.slane %v376_v41, 1  ;;  %v412_v51 = vshll.u32 %v1574_v45, 16  ;;  %v1578_v7 = vld [vmem:[%s2039_s30 + $0x68] ss:$0 sps:$4 sm:$0x11]   ;;  %1392 = vmatpush3.bf16.msra.mxu0 %v1581_v4  ;;  %1417 = vmatprep.subr.bf16.mxu1 %v1581_v4  ;;  %s1251_s20 = sshll.u32 %s2349_s9, 6 }
  0x7c   : > { %v464_v52 = vrot.slane %v1574_v45, 1  ;;  %v409_v54 = vrot.slane %v407_v47, 1  ;;  %v417_v58 = vshrl.u32 %v2103_v53, 16  ;;  %v419_v62 = vshll.u32 %v2103_v53, 16  ;;  %1393 = vmatprep.subr.bf16.mxu0 %v1582_v14  ;;  %1422 = vmatpush3.bf16.msra.mxu1 %v1581_v4  ;;  %v1584_v40 = vld [vmem:[#allocation5 + $0x18] sm:$0xff]   ;;  %s2366_s12 = scalar_lea.vmem [#allocation7], %s1251_s20 }
  0x7d   : > { %430 = vrot.lane.b32.xlu0 %v355_v34, %s1811_s4  ;;  %v414_v56 = vrot.slane %v412_v51, 1  ;;  %v424_v63 = vshll.u32 %v1576_v55, 16  ;;  %v466_v2 = vrot.slane %v2103_v53, 1  ;;  %v2123_v5 = vsel %vm331_vm1, %v374_v49, %v378_v50  ;;  %v1580_v21 = vld [vmem:[%s2039_s30 + $0x74] ss:$0 sps:$4 sm:$0x11]   ;;  %1418 = vmatprep.subr.bf16.mxu1 %v1582_v14 }
  0x7e   : > { %542 = vrot.lane.b32.xlu1 %v2082_v35, %s1809_s25  ;;  %v2109_v57 = vsel %vm444_vm0, %v463_v48, %v464_v52  ;;  %v410_v61 = vor.u32 %v409_v54, %v405_v46  ;;  %v467_v6 = vrot.slane %v1576_v55, 1  ;;  %v510_v8 = vshrl.u32 %v2113_v59, 16  ;;  %v1570_v46 = vld [vmem:[%s2039_s30 + $0x38] ss:$0 sps:$4 sm:$0x11]   ;;  %v2182_v52 = vld [vmem:[%s2039_s30 + $0x3c] sm:$0xff]  }
  0x7f   : > { %v512_v9 = vshll.u32 %v2113_v59, 16  ;;  %v421_v11 = vrot.slane %v419_v62, 1  ;;  %v426_v12 = vrot.slane %v424_v63, 1  ;;  %v537_v13 = vrot.slane %v2113_v59, 1  ;;  %1394 = vmatpush3.bf16.msra.mxu0 %v1582_v14  ;;  %v1585_v49 = vld [vmem:[#allocation5 + $0x20] ss:$0 sps:$4 sm:$0xff]  }
  0x80   : > { %v2131_v10 = vsel %vm331_vm1, %v410_v61, %v414_v56  ;;  %v2135_v15 = vsel %vm444_vm0, %v466_v2, %v467_v6  ;;  %v517_v17 = vshll.u32 %v1578_v7, 16  ;;  %v538_v18 = vrot.slane %v1578_v7, 1  ;;  %1395 = vmatprep.subr.bf16.mxu0 %v1583_v19  ;;  %1423 = vmatpush3.bf16.msra.mxu1 %v1582_v14  ;;  %v1572_v56 = vld [vmem:[%s2039_s30 + $0x44] ss:$0 sps:$4 sm:$0x11]   ;;  %s1307_s10 = sshll.u32 %s1786_s18, 4 }
  0x81   : > { %521 = vrot.lane.b32.xlu0 %v355_v34, %s1812_s26  ;;  %v514_v16 = vrot.slane %v512_v9, 1  ;;  %v422_v20 = vor.u32 %v421_v11, %v417_v58  ;;  %v581_v23 = vshrl.u32 %v2116_v60, 16  ;;  %v583_v27 = vshll.u32 %v2116_v60, 16  ;;  %1419 = vmatprep.subr.bf16.mxu1 %v1583_v19  ;;  %s1308_s15 = sshll.u32 %s1790_s19, 5  ;;  %s1095_s5 = sshll.u32 %s2366_s12, 4  ;;  %s2420_s5 = int_to_ptr.vmem [resolvable:$true] %s1095_s5 }
  0x82   : > { %523 = vrot.lane.b32.xlu1 %v2093_v42, %s1812_s26  ;;  %v519_v25 = vrot.slane %v517_v17, 1  ;;  %v2142_v26 = vsel %vm444_vm0, %v537_v13, %v538_v18  ;;  %v588_v29 = vshll.u32 %v1580_v21, 16  ;;  %v608_v30 = vrot.slane %v2116_v60, 1  ;;  %s1092_s6 = sadd.s32 %s1308_s15, %s1307_s10  ;;  %p2583_p7 = scmp.ne.s32.totalorder %s2568_s28, 0 }
  0x83   : > { %v515_v24 = vor.u32 %v514_v16, %v510_v8  ;;  %v2148_v28 = vsel %vm331_vm1, %v422_v20, %v426_v12  ;;  %v609_v31 = vrot.slane %v1580_v21, 1  ;;  %v585_v36 = vrot.slane %v583_v27, 1  ;;  %1396 = vmatpush3.bf16.msra.mxu0 %v1583_v19  ;;  %s1309_s29 = sshll.u32 %s1092_s6, 6 }
  0x84   : > { %v590_v37 = vrot.slane %v588_v29, 1  ;;  %v456_v45 = vsel %vm444_vm0, %v454_v43, %v455_v44  ;;  %v383_v47 = vshll.u32 %v2152_v33, 16  ;;  %1397 = vmatprep.subr.bf16.mxu0 %v1584_v40  ;;  %1424 = vmatpush3.bf16.msra.mxu1 %v1583_v19  ;;  %v381_v32 = vshrl.u32 %v2152_v33, 16 }
  0x85   : > { %561 = vrot.lane.b32.xlu0 %v2042_v0, %s1813_s23  ;;  %v2155_v34 = vsel %vm331_vm1, %v515_v24, %v519_v25  ;;  %v2158_v39 = vsel %vm444_vm0, %v608_v30, %v609_v31  ;;  %v586_v41 = vor.u32 %v585_v36, %v581_v23  ;;  %1420 = vmatprep.subr.bf16.mxu1 %v1584_v40  ;;  %v388_v43 = vshll.u32 %v1570_v46, 16 }
  0x86   : > { %563 = vrot.lane.b32.xlu1 %v2068_v22, %s1813_s23  ;;  %v818_v44 = vsel %vm816_vm2, %v1585_v49, 0  ;;  %v457_v55 = vrot.slane %v2152_v33, 1  ;;  %v395_v58 = vshll.u32 %v2182_v52, 16  ;;  %v393_v62 = vshrl.u32 %v2182_v52, 16 }
  0x87   : > { %v2172_v48 = vsel %vm331_vm1, %v586_v41, %v590_v37  ;;  %1398 = vmatpush3.bf16.msra.mxu0 %v1584_v40  ;;  %v390_v51 = vrot.slane %v388_v43, 1  ;;  %v400_v2 = vshll.u32 %v1572_v56, 16  ;;  %v460_v7 = vrot.slane %v2182_v52, 1 }
  0x88   : > { %1427 = vmatprep.subr.msk.bf16.mxu0 %vm816_vm2, %v1585_v49  ;;  %1425 = vmatpush3.bf16.msra.mxu1 %v1584_v40  ;;  %v397_v63 = vrot.slane %v395_v58, 1  ;;  %v461_v8 = vrot.slane %v1572_v56, 1  ;;  %vm746_vm10 = vcmask 523264   ;;  %vm799_vm11 = vcmask 588800  }
  0x89   : > { %592 = vrot.lane.b32.xlu0 %v2093_v42, %s1814_s24  ;;  %1428 = vmatprep.subr.msk.bf16.mxu1 %vm816_vm2, %v1585_v49  ;;  %v402_v6 = vrot.slane %v400_v2, 1 }
  0x8a   : > { %594 = vrot.lane.b32.xlu1 %v2123_v5, %s1814_s24  ;;  %v398_v4 = vor.u32 %v397_v63, %v393_v62  ;;  %v462_v9 = vsel %vm444_vm0, %v460_v7, %v461_v8 }
  0x8b   : > { %1400 = vmatpush3.bf16.msra.mxu0 %v818_v44 }
  0x8c   : > { %1426 = vmatpush3.bf16.msra.mxu1 %v818_v44 }
  0x8d   : > { %611 = vrot.lane.b32.xlu0 %v2082_v35, %s1815_s8 }
  0x8e   : > { %432 = vrot.lane.b32.xlu1 %v2093_v42, %s1811_s4  ;;  %v385_v42 = vrot.slane %v383_v47, 1 }
  0x90   : > { %v386_v50 = vor.u32 %v385_v42, %v381_v32 }
  0x91   : > { %613 = vrot.lane.b32.xlu0 %v456_v45, %s1815_s8 }
  0x92   : > { %434 = vrot.lane.b32.xlu1 %v2123_v5, %s1811_s4  ;;  %v391_v54 = vsel %vm331_vm1, %v386_v50, %v390_v51 }
  0x95   : > { %473 = vrot.lane.b32.xlu0 %v2082_v35, %s1810_s11  ;;  %v458_v35 = vrot.slane %v1570_v46, 1 }
  0x96   : > { %475 = vrot.lane.b32.xlu1 %v456_v45, %s1810_s11 }
  0x97   : > { %v459_v61 = vsel %vm444_vm0, %v457_v55, %v458_v35 }
  0x99   : > { %494 = vrot.lane.b32.xlu0 %v2068_v22, %s1808_s27 }
  0x9a   : > { %496 = vrot.lane.b32.xlu1 %v2152_v33, %s1808_s27 }
  0x9d   : > { %525 = vrot.lane.b32.xlu0 %v2123_v5, %s1812_s26  ;;  %v403_v5 = vsel %vm331_vm1, %v398_v4, %v402_v6 }
  0x9e   : > { %527 = vrot.lane.b32.xlu1 %v391_v54, %s1812_s26 }
  0xa1   : > { %544 = vrot.lane.b32.xlu0 %v456_v45, %s1809_s25 }
  0xa2   : > { %546 = vrot.lane.b32.xlu1 %v459_v61, %s1809_s25 }
  0xa5   : > { %565 = vrot.lane.b32.xlu0 %v2152_v33, %s1813_s23 }
  0xa6   : > { %567 = vrot.lane.b32.xlu1 %v2182_v52, %s1813_s23 }
  0xa9   : > { %596 = vrot.lane.b32.xlu0 %v391_v54, %s1814_s24 }
  0xaa   : > { %598 = vrot.lane.b32.xlu1 %v403_v5, %s1814_s24 }
  0xad   : > { %615 = vrot.lane.b32.xlu0 %v459_v61, %s1815_s8 }
  0xae   : > { %436 = vrot.lane.b32.xlu1 %v391_v54, %s1811_s4 }
  0xb1   : > { %617 = vrot.lane.b32.xlu0 %v462_v9, %s1815_s8 }
  0xb2   : > { %438 = vrot.lane.b32.xlu1 %v403_v5, %s1811_s4 }
  0xb5   : > { %477 = vrot.lane.b32.xlu0 %v459_v61, %s1810_s11 }
  0xb6   : > { %479 = vrot.lane.b32.xlu1 %v462_v9, %s1810_s11 }
  0xb9   : > { %498 = vrot.lane.b32.xlu0 %v2182_v52, %s1808_s27 }
  0xba   : > { %500 = vrot.lane.b32.xlu1 %v2085_v38, %s1808_s27 }
  0xbd   : > { %529 = vrot.lane.b32.xlu0 %v403_v5, %s1812_s26 }
  0xbe   : > { %531 = vrot.lane.b32.xlu1 %v2131_v10, %s1812_s26 }
  0xc1   : > { %548 = vrot.lane.b32.xlu0 %v462_v9, %s1809_s25 }
  0xc2   : > { %550 = vrot.lane.b32.xlu1 %v2109_v57, %s1809_s25 }
  0xc5   : > { %569 = vrot.lane.b32.xlu0 %v2085_v38, %s1813_s23 }
  0xc6   : > { %571 = vrot.lane.b32.xlu1 %v2103_v53, %s1813_s23 }
  0xc9   : > { %600 = vrot.lane.b32.xlu0 %v2131_v10, %s1814_s24 }
  0xca   : > { %602 = vrot.lane.b32.xlu1 %v2148_v28, %s1814_s24 }
  0xcd   : > { %619 = vrot.lane.b32.xlu0 %v2109_v57, %s1815_s8 }
  0xce   : > { %440 = vrot.lane.b32.xlu1 %v2131_v10, %s1811_s4 }
  0xd1   : > { %621 = vrot.lane.b32.xlu0 %v2135_v15, %s1815_s8 }
  0xd2   : > { %442 = vrot.lane.b32.xlu1 %v2148_v28, %s1811_s4  ;;  %s1644_s4 = scalar_lea.vmem %s2420_s5, 1024 }
  0xd3   : > { %p1645_p4 = scmp.ne.s32.totalorder %s2420_s5, %s1644_s4 }
  0xd5   : > { %481 = vrot.lane.b32.xlu0 %v2109_v57, %s1810_s11  ;;  %p1646_p9 = pnand %p1645_p4, %p2583_p7 }
  0xd6   : > { %483 = vrot.lane.b32.xlu1 %v2135_v15, %s1810_s11  ;;  %s1075_s11 = scalar_lea.sflag [#allocation4], %s2349_s9 }
  0xd7   : > { %p1647_p11 = pneg %p1646_p9 }
  0xd9   : > { %502 = vrot.lane.b32.xlu0 %v2103_v53, %s1808_s27 }
  0xda   : > { %504 = vrot.lane.b32.xlu1 %v2113_v59, %s1808_s27 }
  0xdd   : > { %533 = vrot.lane.b32.xlu0 %v2148_v28, %s1812_s26 }
  0xde   : > { %535 = vrot.lane.b32.xlu1 %v2155_v34, %s1812_s26  ;;  %s1816_s26 = smov [#allocation7]  }
  0xe1   : > { %552 = vrot.lane.b32.xlu0 %v2135_v15, %s1809_s25 }
  0xe2   : > { %554 = vrot.lane.b32.xlu1 %v2142_v26, %s1809_s25  ;;  %s2426_s25 = scalar_lea.hbm %s2549_s2, %s1309_s29 }
  0xe3   : > { %v493_v57 = vpop.permute.xlu1 %492  ;;  %v491_v10 = vpop.permute.xlu0 %490 }
  0xe5   : > { %573 = vrot.lane.b32.xlu0 %v2113_v59, %s1813_s23 }
  0xe6   : > { %575 = vrot.lane.b32.xlu1 %v2116_v60, %s1813_s23  ;;  %s1648_s23 = sshll.u32 %s1816_s26, 4  ;;  %s1649_s23 = int_to_ptr.vmem [resolvable:$false] %s1648_s23 }
  0xe7   : > { %v541_v11 = vpop.permute.xlu0 %540  ;;  %p1651_p13 = scmp.lt.s32.totalorder %s2420_s5, %s1649_s23 }
  0xe8   : > { %v470_v12 = vpop.permute.xlu1 %469 }
  0xe9   : > { %604 = vrot.lane.b32.xlu0 %v2155_v34, %s1814_s24 }
  0xea   : > { %606 = vrot.lane.b32.xlu1 %v2172_v48, %s1814_s24  ;;  %s1650_s24 = scalar_lea.vmem %s1649_s23, 2048 }
  0xeb   : > { %v429_v13 = vpop.permute.xlu0 %428  ;;  %p1652_p0 = scmp.lt.s32.totalorder %s1650_s24, %s1644_s4 }
  0xec   : > { %v472_v14 = vpop.permute.xlu1 %471  ;;  %v629_v60 = vsel %vm627_vm3, %v2051_v3, %v429_v13 }
  0xed   : > { %623 = vrot.lane.b32.xlu0 %v2142_v26, %s1815_s8  ;;  %v646_v19 = vsel %vm644_vm4, %v629_v60, %v470_v12  ;;  %p1653_p2 = por %p1652_p0, %p1651_p13 }
  0xee   : > { %625 = vrot.lane.b32.xlu1 %v2158_v39, %s1815_s8  ;;  %v663_v24 = vsel %vm661_vm5, %v646_v19, %v491_v10 }
  0xef   : > { %v431_v59 = vpop.permute.xlu0 %430  ;;  %p1654_p5 = pnand %p1653_p2, %p1647_p11 }
  0xf0   : > { %v543_v15 = vpop.permute.xlu1 %542  ;;  %v631_v18 = vsel %vm627_vm3, %v2045_v1, %v431_v59 }
  0xf1   : > { %v648_v21 = vsel %vm644_vm4, %v631_v18, %v472_v14 }
  0xf2   : > { %v665_v3 = vsel %vm661_vm5, %v648_v21, %v493_v57 }
  0xf3   : > { %v522_v16 = vpop.permute.xlu0 %521 }
  0xf4   : > { %v524_v17 = vpop.permute.xlu1 %523  ;;  %v680_v25 = vsel %vm678_vm6, %v663_v24, %v522_v16 }
  0xf5   : > { %v697_v1 = vsel %vm695_vm7, %v680_v25, %v541_v11  ;;  %v682_v28 = vsel %vm678_vm6, %v665_v3, %v524_v17 }
  0xf6   : > { %v699_v37 = vsel %vm695_vm7, %v682_v28, %v543_v15 }
  0xf7   : > { %v562_v20 = vpop.permute.xlu0 %561 }
  0xf8   : > { %v564_v23 = vpop.permute.xlu1 %563  ;;  %v714_v29 = vsel %vm712_vm8, %v697_v1, %v562_v20 }
  0xf9   : > { %v716_v39 = vsel %vm712_vm8, %v699_v37, %v564_v23 }
  0xfb   : > { %v593_v26 = vpop.permute.xlu0 %592 }
  0xfc   : > { %v595_v27 = vpop.permute.xlu1 %594  ;;  %v731_v30 = vsel %vm729_vm9, %v714_v29, %v593_v26 }
  0xfd   : > { %v733_v40 = vsel %vm729_vm9, %v716_v39, %v595_v27 }
  0xff   : > { %v612_v31 = vpop.permute.xlu0 %611 }
 0x100   : > { %v433_v34 = vpop.permute.xlu1 %432  ;;  %v748_v36 = vsel %vm746_vm10, %v731_v30, %v612_v31 }
 0x101   : > { %1401 = vmatprep.mubr.msk.bf16.mxu0 %vm799_vm11, %v748_v36  ;;  %v633_v55 = vsel %vm627_vm3, %v2042_v0, %v433_v34 }
 0x103   : > { %v614_v41 = vpop.permute.xlu0 %613 }
 0x104   : > { %v435_v45 = vpop.permute.xlu1 %434  ;;  %v750_v46 = vsel %vm746_vm10, %v733_v40, %v614_v41 }
 0x105   : > { %1402 = vmatmul.mubr.msk.bf16.vlgmr.msra.gmra.mrb[0].mxu0 %vm799_vm11, %v750_v46  ;;  %v635_v63 = vsel %vm627_vm3, %v2068_v22, %v435_v45 }
 0x107   : > { %v474_v47 = vpop.permute.xlu0 %473 }
 0x108   : > { %v476_v48 = vpop.permute.xlu1 %475  ;;  %v650_v35 = vsel %vm644_vm4, %v633_v55, %v474_v47 }
 0x109   : > { %v652_v4 = vsel %vm644_vm4, %v635_v63, %v476_v48 }
 0x10b   : > { %v495_v49 = vpop.permute.xlu0 %494 }
 0x10c   : > { %v497_v32 = vpop.permute.xlu1 %496  ;;  %v667_v56 = vsel %vm661_vm5, %v650_v35, %v495_v49 }
 0x10d   : > { %v669_v5 = vsel %vm661_vm5, %v652_v4, %v497_v32 }
 0x10f   : > { %v526_v42 = vpop.permute.xlu0 %525 }
 0x110   : > { %v528_v43 = vpop.permute.xlu1 %527  ;;  %v684_v61 = vsel %vm678_vm6, %v667_v56, %v526_v42 }
 0x111   : > { %v686_v8 = vsel %vm678_vm6, %v669_v5, %v528_v43 }
 0x113   : > { %v545_v44 = vpop.permute.xlu0 %544 }
 0x114   : > { %v547_v50 = vpop.permute.xlu1 %546  ;;  %v701_v2 = vsel %vm695_vm7, %v684_v61, %v545_v44 }
 0x115   : > { %v703_v10 = vsel %vm695_vm7, %v686_v8, %v547_v50 }
 0x117   : > { %v566_v51 = vpop.permute.xlu0 %565 }
 0x118   : > { %v568_v54 = vpop.permute.xlu1 %567  ;;  %v718_v6 = vsel %vm712_vm8, %v701_v2, %v566_v51 }
 0x119   : > { %v720_v22 = vsel %vm712_vm8, %v703_v10, %v568_v54 }
 0x11b   : > { %v597_v58 = vpop.permute.xlu0 %596 }
 0x11c   : > { %v599_v62 = vpop.permute.xlu1 %598  ;;  %v735_v0 = vsel %vm729_vm9, %v718_v6, %v597_v58 }
 0x11d   : > { %v737_v11 = vsel %vm729_vm9, %v720_v22, %v599_v62 }
 0x11f   : > { %v616_v7 = vpop.permute.xlu0 %615 }
 0x120   : > { %v437_v9 = vpop.permute.xlu1 %436  ;;  %v752_v57 = vsel %vm746_vm10, %v735_v0, %v616_v7 }
 0x121   : > { %1405 = vmatprep.mubr.msk.bf16.mxu0 %vm799_vm11, %v752_v57  ;;  %v637_v24 = vsel %vm627_vm3, %v2152_v33, %v437_v9 }
 0x123   : > { %v618_v12 = vpop.permute.xlu0 %617 }
 0x124   : > { %v439_v13 = vpop.permute.xlu1 %438  ;;  %v754_v14 = vsel %vm746_vm10, %v737_v11, %v618_v12 }
 0x125   : > { %1406 = vmatmul.mubr.msk.bf16.gmra.mrb[4].mxu0 %vm799_vm11, %v754_v14  ;;  %v639_v28 = vsel %vm627_vm3, %v2182_v52, %v439_v13 }
 0x127   : > { %v478_v59 = vpop.permute.xlu0 %477 }
 0x128   : > { %v480_v15 = vpop.permute.xlu1 %479  ;;  %v654_v25 = vsel %vm644_vm4, %v637_v24, %v478_v59 }
 0x129   : > { %v656_v30 = vsel %vm644_vm4, %v639_v28, %v480_v15 }
 0x12b   : > { %v499_v60 = vpop.permute.xlu0 %498 }
 0x12c   : > { %v501_v16 = vpop.permute.xlu1 %500  ;;  %v671_v3 = vsel %vm661_vm5, %v654_v25, %v499_v60 }
 0x12d   : > { %v673_v34 = vsel %vm661_vm5, %v656_v30, %v501_v16 }
 0x12f   : > { %v530_v17 = vpop.permute.xlu0 %529 }
 0x130   : > { %v532_v18 = vpop.permute.xlu1 %531  ;;  %v688_v27 = vsel %vm678_vm6, %v671_v3, %v530_v17 }
 0x131   : > { %v690_v37 = vsel %vm678_vm6, %v673_v34, %v532_v18 }
 0x133   : > { %v549_v19 = vpop.permute.xlu0 %548 }
 0x134   : > { %v551_v20 = vpop.permute.xlu1 %550  ;;  %v705_v29 = vsel %vm695_vm7, %v688_v27, %v549_v19 }
 0x135   : > { %v707_v41 = vsel %vm695_vm7, %v690_v37, %v551_v20 }
 0x137   : > { %v570_v21 = vpop.permute.xlu0 %569 }
 0x138   : > { %v572_v23 = vpop.permute.xlu1 %571  ;;  %v722_v31 = vsel %vm712_vm8, %v705_v29, %v570_v21 }
 0x139   : > { %v724_v52 = vsel %vm712_vm8, %v707_v41, %v572_v23 }
 0x13b   : > { %v601_v26 = vpop.permute.xlu0 %600 }
 0x13c   : > { %v603_v1 = vpop.permute.xlu1 %602  ;;  %v739_v33 = vsel %vm729_vm9, %v722_v31, %v601_v26 }
 0x13d   : > { %v741_v45 = vsel %vm729_vm9, %v724_v52, %v603_v1 }
 0x13f   : > { %v620_v36 = vpop.permute.xlu0 %619 }
 0x140   : > { %v441_v39 = vpop.permute.xlu1 %440  ;;  %v756_v40 = vsel %vm746_vm10, %v739_v33, %v620_v36 }
 0x141   : > { %1409 = vmatprep.mubr.msk.bf16.mxu1 %vm799_vm11, %v756_v40  ;;  %v641_v56 = vsel %vm627_vm3, %v2085_v38, %v441_v39 }
 0x143   : > { %v622_v46 = vpop.permute.xlu0 %621 }
 0x144   : > { %v443_v47 = vpop.permute.xlu1 %442  ;;  %v758_v48 = vsel %vm746_vm10, %v741_v45, %v622_v46 }
 0x145   : > { %1410 = vmatmul.mubr.msk.bf16.vlgmr.msra.gmra.mrb[0].mxu1 %vm799_vm11, %v758_v48  ;;  %v643_v58 = vsel %vm627_vm3, %v2103_v53, %v443_v47 }
 0x147   : > { %v482_v49 = vpop.permute.xlu0 %481 }
 0x148   : > { %v484_v32 = vpop.permute.xlu1 %483  ;;  %v658_v61 = vsel %vm644_vm4, %v641_v56, %v482_v49 }
 0x149   : > { %v660_v62 = vsel %vm644_vm4, %v643_v58, %v484_v32 }
 0x14b   : > { %v503_v42 = vpop.permute.xlu0 %502 }
 0x14c   : > { %v505_v43 = vpop.permute.xlu1 %504  ;;  %v675_v63 = vsel %vm661_vm5, %v658_v61, %v503_v42 }
 0x14d   : > { %v677_v4 = vsel %vm661_vm5, %v660_v62, %v505_v43 }
 0x14f   : > { %v534_v44 = vpop.permute.xlu0 %533 }
 0x150   : > { %v536_v50 = vpop.permute.xlu1 %535  ;;  %v692_v6 = vsel %vm678_vm6, %v675_v63, %v534_v44 }
 0x151   : > { %v694_v0 = vsel %vm678_vm6, %v677_v4, %v536_v50 }
 0x153   : > { %v553_v51 = vpop.permute.xlu0 %552 }
 0x154   : > { %v555_v54 = vpop.permute.xlu1 %554  ;;  %v709_v38 = vsel %vm695_vm7, %v692_v6, %v553_v51 }
 0x155   : > { %v711_v7 = vsel %vm695_vm7, %v694_v0, %v555_v54 }
 0x157   : > { %v574_v55 = vpop.permute.xlu0 %573 }
 0x158   : > { %v576_v35 = vpop.permute.xlu1 %575  ;;  %v726_v53 = vsel %vm712_vm8, %v709_v38, %v574_v55 }
 0x159   : > { %v728_v8 = vsel %vm712_vm8, %v711_v7, %v576_v35 }
 0x15b   : > { %v605_v2 = vpop.permute.xlu0 %604 }
 0x15c   : > { %v607_v5 = vpop.permute.xlu1 %606  ;;  %v743_v9 = vsel %vm729_vm9, %v726_v53, %v605_v2 }
 0x15d   : > { %v745_v10 = vsel %vm729_vm9, %v728_v8, %v607_v5 }
 0x15f   : > { %v624_v57 = vpop.permute.xlu0 %623 }
 0x160   : > { %v626_v22 = vpop.permute.xlu1 %625  ;;  %v760_v11 = vsel %vm746_vm10, %v743_v9, %v624_v57 }
 0x161   : > { %v762_v12 = vsel %vm746_vm10, %v745_v10, %v626_v22  ;;  %1413 = vmatprep.mubr.msk.bf16.mxu1 %vm799_vm11, %v760_v11 }
 0x162   : > { %1414 = vmatmul.mubr.msk.bf16.gmra.mrb[4].mxu1 %vm799_vm11, %v762_v12 }
 0x1d8   : > { %v2352_v13 = vpop.f32.mrb[0].mxu0 }
 0x1d9   : > { %v2354_v14 = vpop.f32.mrb[1].mxu0 }
 0x1da   : > { %v2356_v59 = vpop.f32.mrb[2].mxu0 }
 0x1db   : > { %v1339_v15 = vpack.c.bf16 %v2356_v59, %v2352_v13  ;;  %v2360_v60 = vpop.f32.mrb[3].mxu0 }
 0x1dc   : > { %v1334_v16 = vpack.c.bf16 %v2360_v60, %v2354_v14  ;;  %v997_v17 = vadd.f32 %v2360_v60, %v2354_v14 }
 0x1dd   : > { %1371 = vst [vmem:[%s2366_s12 + $0x8] sm:$0xff] %v1339_v15  }
 0x1de   : > { %1335 = vst [vmem:[%s2366_s12] sm:$0xff] %v1334_v16   ;;  %v998_v18 = vadd.f32 %v2352_v13, %v997_v17 }
 0x1e0   : > { %v999_v19 = vadd.f32 %v2356_v59, %v998_v18 }
 0x1f8   : > { %v2372_v20 = vpop.f32.mrb[4].mxu0 }
 0x1f9   : > { %v2374_v21 = vpop.f32.mrb[5].mxu0 }
 0x1fa   : > { %v1000_v23 = vadd.f32 %v999_v19, %v2374_v21  ;;  %v2377_v24 = vpop.f32.mrb[6].mxu0 }
 0x1fb   : > { %v1349_v25 = vpack.c.bf16 %v2377_v24, %v2372_v20  ;;  %v2381_v3 = vpop.f32.mrb[7].mxu0 }
 0x1fc   : > { %v1344_v26 = vpack.c.bf16 %v2381_v3, %v2374_v21  ;;  %v1001_v27 = vadd.f32 %v1000_v23, %v2381_v3 }
 0x1fd   : > { %1373 = vst [vmem:[%s2366_s12 + $0x18] sm:$0xff] %v1349_v25  }
 0x1fe   : > { %1372 = vst [vmem:[%s2366_s12 + $0x10] sm:$0xff] %v1344_v26   ;;  %v1002_v1 = vadd.f32 %v2372_v20, %v1001_v27 }
 0x200   : > { %v1003_v28 = vadd.f32 %v2377_v24, %v1002_v1 }
 0x218   : > { %v2390_v29 = vpop.f32.mrb[0].mxu1 }
 0x219   : > { %v2392_v30 = vpop.f32.mrb[1].mxu1 }
 0x21a   : > { %v1004_v31 = vadd.f32 %v1003_v28, %v2392_v30  ;;  %v2395_v34 = vpop.f32.mrb[2].mxu1 }
 0x21b   : > { %v1359_v33 = vpack.c.bf16 %v2395_v34, %v2390_v29  ;;  %v2399_v36 = vpop.f32.mrb[3].mxu1 }
 0x21c   : > { %v1354_v37 = vpack.c.bf16 %v2399_v36, %v2392_v30  ;;  %v1005_v39 = vadd.f32 %v1004_v31, %v2399_v36 }
 0x21d   : > { %1375 = vst [vmem:[%s2366_s12 + $0x28] sm:$0xff] %v1359_v33  }
 0x21e   : > { %1374 = vst [vmem:[%s2366_s12 + $0x20] sm:$0xff] %v1354_v37   ;;  %v1006_v40 = vadd.f32 %v2390_v29, %v1005_v39 }
 0x220   : > { %v1007_v41 = vadd.f32 %v2395_v34, %v1006_v40 }
 0x235   : > { %v2411_v52 = vpop.f32.mrb[4].mxu1 }
 0x236   : > { %v2413_v45 = vpop.f32.mrb[5].mxu1 }
 0x237   : > { %v1008_v46 = vadd.f32 %v1007_v41, %v2413_v45  ;;  %v2416_v47 = vpop.f32.mrb[6].mxu1 }
 0x238   : > { %v1369_v48 = vpack.c.bf16 %v2416_v47, %v2411_v52  ;;  %v905_v49 = vpop.f32.mrb[7].mxu1 }
 0x239   : > { %v1364_v32 = vpack.c.bf16 %v905_v49, %v2413_v45  ;;  %v1009_v42 = vadd.f32 %v1008_v46, %v905_v49 }
 0x23a   : > { %1377 = vst [vmem:[%s2366_s12 + $0x38] sm:$0xff] %v1369_v48  }
 0x23b   : > { %1376 = vst [vmem:[%s2366_s12 + $0x30] sm:$0xff] %v1364_v32   ;;  %v1010_v43 = vadd.f32 %v2411_v52, %v1009_v42 }
 0x23c   : > { %1657 = shalt.err (!%p1654_p5)
}
 0x23d   : > { %s1658_s20 = scalar_lea.hbm %s2426_s25, 1024  ;;  %s1662_s15 = scalar_lea.hbm %s2549_s2, 4096 }
 0x23e   : > { %p1659_p8 = scmp.ne.s32.totalorder %s2426_s25, %s1658_s20  ;;  %p1663_p6 = scmp.lt.u32.totalorder %s2426_s25, %s2549_s2 }
 0x23f   : > { %p1664_p10 = scmp.lt.u32.totalorder %s1662_s15, %s1658_s20  ;;  %p1666_p4 = scmp.lt.u32.totalorder %s1658_s20, %s2426_s25 }
 0x240   : > { %p1660_p12 = pnand %p1659_p8, %p2583_p7 }
 0x241   : > { %p1665_p3 = por %p1664_p10, %p1663_p6 }
 0x242   : > { %p1661_p1 = pneg %p1660_p12 }
 0x243   : > { %p1667_p9 = por %p1666_p4, %p1665_p3 }
 0x245   : > { %p1668_p11 = pnand %p1667_p9, %p1661_p1 }
 0x247   : > { %1671 = shalt.err (!%p1668_p11)
}
 0x248   : > { %s1817_s30 = smov 4   ;;  %v1011_v44 = vadd.f32 %v2416_v47, %v1010_v43  ;;  %s1252_s27 = sshll.u32 %s2349_s9, 1 }
 0x249   : > { %1438 = dma.vmem_to_hbm [thread:$0]  (%p2583_p7), %s2420_s5, 1024, %s2426_s25, %s1075_s11, %s1815_s8, %s1815_s8, %s1817_s30  }
 0x24a   : > { %v1012_v50 = vrot.slane %v1011_v44, 4  ;;  %s2459_s4 = scalar_lea.vmem [#allocation8], %s1252_s27  ;;  %s1310_s8 = sshll.u32 %s1790_s19, 1 }
 0x24b   : > { %s1109_s5 = sadd.s32 %s1786_s18, %s1310_s8  ;;  %s1113_s11 = sshll.u32 %s2459_s4, 4  ;;  %s2485_s11 = int_to_ptr.vmem [resolvable:$true] %s1113_s11 }
 0x24c   : > { %v1013_v51 = vadd.f32 %v1012_v50, %v1011_v44  ;;  %s1311_s25 = sshll.u32 %s1109_s5, 5  ;;  %s1080_s19 = scalar_lea.sflag [#allocation9], %s2349_s9 }
 0x24d   : > { %s2483_s24 = scalar_lea.hbm %s2550_s3, %s1311_s25  ;;  %s1672_s20 = scalar_lea.vmem %s2485_s11, 32 }
 0x24e   : > { %v1014_v54 = vrot.slane %v1013_v51, 2  ;;  %p1673_p13 = scmp.ne.s32.totalorder %s2485_s11, %s1672_s20  ;;  %s1818_s18 = smov [#allocation8]  }
 0x24f   : > { %s1676_s12 = sshll.u32 %s1818_s18, 4  ;;  %s1677_s12 = int_to_ptr.vmem [resolvable:$false] %s1676_s12 }
 0x250   : > { %v1015_v55 = vadd.f32 %v1014_v54, %v1013_v51  ;;  %p1674_p0 = pnand %p1673_p13, %p2583_p7  ;;  %s1678_s10 = scalar_lea.vmem %s1677_s12, 64 }
 0x251   : > { %p1679_p5 = scmp.lt.s32.totalorder %s2485_s11, %s1677_s12  ;;  %p1680_p8 = scmp.lt.s32.totalorder %s1678_s10, %s1672_s20 }
 0x252   : > { %v1016_v35 = vrot.slane %v1015_v55, 1  ;;  %p1675_p2 = pneg %p1674_p0 }
 0x253   : > { %p1681_p12 = por %p1680_p8, %p1679_p5 }
 0x254   : > { %v1017_v56 = vadd.f32 %v1016_v35, %v1015_v55 }
 0x255   : > { %p1682_p1 = pnand %p1681_p12, %p1675_p2 }
 0x256   : > { %v1018_v58 = vmul.f32 0.0078125, %v1017_v56  ;;  %1035 = vst [vmem:[%s2459_s4] sm:$0x1] %v1017_v56 }
 0x258   : > { %v1019_v61 = vsub.f32 %v2354_v14, %v1018_v58  ;;  %v1020_v62 = vsub.f32 %v2360_v60, %v1018_v58  ;;  %v1021_v63 = vsub.f32 %v2352_v13, %v1018_v58  ;;  %v1022_v2 = vsub.f32 %v2356_v59, %v1018_v58 }
 0x259   : > { %v1023_v4 = vsub.f32 %v2374_v21, %v1018_v58  ;;  %v1024_v6 = vsub.f32 %v2381_v3, %v1018_v58  ;;  %v1025_v5 = vsub.f32 %v2372_v20, %v1018_v58  ;;  %v1026_v0 = vsub.f32 %v2377_v24, %v1018_v58 }
 0x25a   : > { %v1027_v38 = vsub.f32 %v2392_v30, %v1018_v58  ;;  %v1028_v7 = vsub.f32 %v2399_v36, %v1018_v58  ;;  %v1029_v53 = vsub.f32 %v2390_v29, %v1018_v58  ;;  %v1030_v8 = vsub.f32 %v2395_v34, %v1018_v58 }
 0x25b   : > { %v1031_v9 = vsub.f32 %v2413_v45, %v1018_v58  ;;  %v1032_v57 = vsub.f32 %v905_v49, %v1018_v58  ;;  %v1033_v10 = vsub.f32 %v2411_v52, %v1018_v58  ;;  %v1034_v22 = vsub.f32 %v2416_v47, %v1018_v58 }
 0x25c   : > { %v1036_v11 = vmul.f32 %v1019_v61, %v1019_v61  ;;  %v1037_v12 = vmul.f32 %v1020_v62, %v1020_v62  ;;  %v1038_v13 = vmul.f32 %v1021_v63, %v1021_v63  ;;  %v1039_v59 = vmul.f32 %v1022_v2, %v1022_v2 }
 0x25d   : > { %v1040_v60 = vmul.f32 %v1023_v4, %v1023_v4  ;;  %v1041_v17 = vmul.f32 %v1024_v6, %v1024_v6  ;;  %v1042_v19 = vmul.f32 %v1025_v5, %v1025_v5  ;;  %v1043_v21 = vmul.f32 %v1026_v0, %v1026_v0 }
 0x25e   : > { %v1052_v14 = vadd.f32 %v1037_v12, %v1036_v11  ;;  %v1044_v24 = vmul.f32 %v1027_v38, %v1027_v38  ;;  %v1045_v3 = vmul.f32 %v1028_v7, %v1028_v7  ;;  %v1046_v27 = vmul.f32 %v1029_v53, %v1029_v53 }
 0x25f   : > { %v1047_v28 = vmul.f32 %v1030_v8, %v1030_v8  ;;  %v1048_v30 = vmul.f32 %v1031_v9, %v1031_v9  ;;  %v1049_v34 = vmul.f32 %v1032_v57, %v1032_v57  ;;  %v1050_v36 = vmul.f32 %v1033_v10, %v1033_v10 }
 0x260   : > { %v1053_v15 = vadd.f32 %v1052_v14, %v1038_v13  ;;  %v1051_v39 = vmul.f32 %v1034_v22, %v1034_v22 }
 0x262   : > { %v1054_v16 = vadd.f32 %v1053_v15, %v1039_v59 }
 0x264   : > { %v1055_v18 = vadd.f32 %v1054_v16, %v1040_v60 }
 0x266   : > { %v1056_v20 = vadd.f32 %v1055_v18, %v1041_v17 }
 0x268   : > { %v1057_v23 = vadd.f32 %v1056_v20, %v1042_v19 }
 0x26a   : > { %v1058_v25 = vadd.f32 %v1057_v23, %v1043_v21 }
 0x26c   : > { %v1059_v26 = vadd.f32 %v1058_v25, %v1044_v24 }
 0x26e   : > { %v1060_v1 = vadd.f32 %v1059_v26, %v1045_v3 }
 0x270   : > { %v1061_v29 = vadd.f32 %v1060_v1, %v1046_v27 }
 0x272   : > { %v1062_v31 = vadd.f32 %v1061_v29, %v1047_v28 }
 0x274   : > { %v1063_v33 = vadd.f32 %v1062_v31, %v1048_v30 }
 0x276   : > { %v1064_v37 = vadd.f32 %v1063_v33, %v1049_v34 }
 0x278   : > { %v1065_v40 = vadd.f32 %v1064_v37, %v1050_v36 }
 0x27a   : > { %v1066_v41 = vadd.f32 %v1065_v40, %v1051_v39 }
 0x27c   : > { %v1067_v52 = vrot.slane %v1066_v41, 4 }
 0x27e   : > { %v1068_v45 = vadd.f32 %v1067_v52, %v1066_v41 }
 0x280   : > { %v1069_v46 = vrot.slane %v1068_v45, 2 }
 0x282   : > { %v1070_v47 = vadd.f32 %v1069_v46, %v1068_v45 }
 0x284   : > { %v1071_v48 = vrot.slane %v1070_v47, 1 }
 0x286   : > { %v1072_v49 = vadd.f32 %v1071_v48, %v1070_v47 }
 0x288   : > { %1073 = vst [vmem:[%s2459_s4 + $0x1] sm:$0x1] %v1072_v49 }
 0x289   : > { %1685 = shalt.err (!%p1682_p1)
}
 0x28a   : > { %s1686_s9 = scalar_lea.hbm %s2483_s24, 32  ;;  %s1690_s29 = scalar_lea.hbm %s2550_s3, 128 }
 0x28b   : > { %p1687_p6 = scmp.ne.s32.totalorder %s2483_s24, %s1686_s9  ;;  %p1691_p4 = scmp.lt.u32.totalorder %s2483_s24, %s2550_s3 }
 0x28c   : > { %p1692_p9 = scmp.lt.u32.totalorder %s1690_s29, %s1686_s9  ;;  %p1694_p13 = scmp.lt.u32.totalorder %s1686_s9, %s2483_s24 }
 0x28d   : > { %p1688_p10 = pnand %p1687_p6, %p2583_p7 }
 0x28e   : > { %p1693_p11 = por %p1692_p9, %p1691_p4 }
 0x28f   : > { %p1689_p3 = pneg %p1688_p10 }
 0x290   : > { %p1695_p0 = por %p1694_p13, %p1693_p11 }
 0x292   : > { %p1696_p2 = pnand %p1695_p0, %p1689_p3 }
 0x294   : > { %1699 = shalt.err (!%p1696_p2)
}
 0x295   : > { %1439 = dma.vmem_to_hbm [thread:$0]  (%p2583_p7), %s2485_s11, 32, %s2483_s24, %s1080_s19  }
 0x296 PF: > { %s2584_s4 = sld [smem:[#allocation14_spill]]  ;;  %s2585_s8 = sld [smem:[#allocation16_spill]] }
 0x297   : > { %p1460_p5 = scmp.ge.s32.totalorder %s1802_s22, 2 }
 0x29c   : > { %s1125_s5 = sand.u32 1, %s2584_s4   ;;  %p2586_p8 = scmp.ne.s32.totalorder %s2585_s8, 0 }
 0x29d   : > { %s1126_s25 = scalar_lea.sflag [#allocation4], %s1125_s5 }
 0x29e   : > { %p1451_p12 = pnand %p1460_p5, %p2586_p8 }
 0x2a0   : > { %1753 = dma.done.wait (!%p1451_p12), %s1126_s25, 1024  }
 0x2a1   : > { %1755 = vsyncadd (!%p1451_p12), %s1126_s25, 4294966272  ;;  %s1135_s26 = scalar_lea.sflag [#allocation9], %s1125_s5 }
 0x2a2   : > { %1757 = dma.done.wait (!%p1451_p12), %s1135_s26, 32  }
 0x2a3   : > { %1759 = vsyncadd (!%p1451_p12), %s1135_s26, 4294967264  ;;  %s24_s22 = sadd.s32 1, %s1802_s22   ;;  %s2587_s18 = sld [smem:[#allocation15_spill]] }
 0x2a4   : > { %p21_p1 = scmp.ge.s32.totalorder %s24_s22, 6   ;;  %s2588_s20 = sld [smem:[#allocation17_spill]] }
 0x2a5   : > { %s2589_s28 = sld [smem:[#allocation18_spill]]  ;;  %s2590_s12 = smov %s1766_s13 }
 0x2a6   : > { %s2591_s13 = smov %s1770_s14  ;;  %s2592_s14 = smov %s1979_s1 }
 0x2a7   : > { %s2593_s15 = smov %s1778_s16  ;;  %s2594_s16 = smov %s1782_s17 }
 0x2a8   : > { %s2595_s17 = smov %s1974_s7  ;;  %s2596_s19 = smov %s1798_s21 }
 0x2a9   :  { %23 = sbr.rel (!%p21_p1) target bundleno = 14 (0xe), region = 95 }
 0x2ab   : > { %s2597_s21 = smov %s2589_s28 }
 0x2b0   :  { %1140 = vsyncpa [#allocation3], 1 }
 0x2b1   :  { %1142 = vsyncpa [#allocation3 + $0x1], 1 }
 0x2b2   :  { %1143 = vsyncpa [#allocation6], 1 }
 0x2b3   :  { %1144 = vsyncpa [#allocation4], 1 }
 0x2b4   :  { %1146 = vsyncpa [#allocation4 + $0x1], 1 }
 0x2b5   :  { %1147 = vsyncpa [#allocation9], 1 }
 0x2b6   :  { %1149 = vsyncpa [#allocation9 + $0x1], 1 }

// kernel: unet_up_forward.3
= control target key start
LH: loop header
LB: loop body
LE: loop exit
PB: predicated region body
PF: predicated region fallthrough
CT: control target
= control target key end

     0   :  { %7 = vsyncpa [#allocation3], 0  ;;  %s1216_s0 = inlined_call_operand.hbm [shape: bf16[2,256,128], index: 0, kind: input, shape index: {}]   ;;  %s1217_s1 = inlined_call_operand.hbm [shape: f32[2,2,128], index: 1, kind: input, shape index: {}]   ;;  %s1218_s2 = inlined_call_operand.hbm [shape: f32[2,256,128], index: 2, kind: output, shape index: {}]  }
   0x1   :  { %9 = vsyncpa [#allocation3 + $0x1], 0 }
   0x2   :  { %10 = vsyncpa [#allocation6], 0 }
   0x3   :  { %12 = vsyncpa [#allocation6 + $0x1], 0 }
   0x4   :  { %13 = vsyncpa [#allocation4], 0 }
   0x5   :  { %15 = vsyncpa [#allocation4 + $0x1], 0  ;;  %s836_s9 = smov 0   ;;  %s838_s10 = smov 0  }
   0x6   :  { %s840_s11 = smov 0   ;;  %s842_s12 = smov 0  }
   0x7   :  { %s844_s13 = smov 0   ;;  %s846_s14 = smov 0  }
   0x8   :  { %s848_s15 = smov 0   ;;  %s850_s16 = smov 0  }
   0x9   :  { %s852_s17 = smov 0   ;;  %s854_s18 = smov 0  }
   0xa   :  { %s856_s19 = smov 0  }
   0xb LB: > { %s455_s20 = sadd.s32 4294967294, %s812_s19   ;;  %s30_s21 = sadd.s32 1, %s804_s17  ;;  %s812_s19 = sphi %s856_s19, %s21_s19   ;;  %s808_s18 = sphi %s854_s18, %s1261_s18   ;;  %s804_s17 = sphi %s852_s17, %s1260_s17   ;;  %s800_s16 = sphi %s850_s16, %s1259_s16   ;;  %s796_s15 = sphi %s848_s15, %s1258_s15   ;;  %s792_s14 = sphi %s846_s14, %s1257_s14   ;;  %s788_s13 = sphi %s844_s13, %s1256_s13   ;;  %s784_s12 = sphi %s842_s12, %s1255_s12   ;;  %s780_s11 = sphi %s840_s11, %s1254_s11   ;;  %s776_s10 = sphi %s838_s10, %s1253_s10   ;;  %s772_s9 = sphi %s836_s9, %s1252_s9  }
   0xc   : > { %p31_p0 = scmp.ge.s32.totalorder %s30_s21, 2  ;;  %s33_s22 = sadd.s32 1, %s808_s18 }
   0xd   : > { %s42_s23 = sadd.s32 1, %s792_s14  ;;  %p1223_p1 = scmp.ne.s32.totalorder %s792_s14, %s788_s13 }
   0xe   : > { %s1263_s21 = smov (%p31_p0, %s30_s21), 0  ;;  %s1265_s22 = smov (!%p31_p0, %s33_s22), %s808_s18 }
   0xf   : > { %1229 = sst [smem:[#allocation11_spill]] %s1263_s21  ;;  %s38_s24 = ssub.s32 %s804_s17, %s1263_s21 }
  0x10   : > { %p1224_p2 = scmp.eq.s32.totalorder %s812_s19, 0  ;;  %p35_p3 = scmp.ge.s32.totalorder %s1265_s22, 2 }
  0x11   : > { %p1225_p4 = scmp.ne.s32.totalorder %s788_s13, %s784_s12  ;;  %p113_p6 = scmp.eq.s32.totalorder %s455_s20, 3 }
  0x12   : > { %p910_p5 = por %p1224_p2, %p1223_p1  ;;  %s1267_s22 = smov (%p35_p3, %s1265_s22), 0 }
  0x13   : > { %1231 = sst [smem:[#allocation12_spill]] %s1267_s22  ;;  %p919_p7 = por %p113_p6, %p1225_p4 }
  0x14   : > { %s925_s27 = ssub.s32 %s808_s18, %s1267_s22  ;;  %p1222_p8 = scmp.lt.s32.totalorder %s812_s19, 4 }
  0x15   : > { %s1232_s26 = scalar_select %p919_p7, 1, 0 }
  0x16   : > { %s39_s28 = sor.u32 %s38_s24, %s925_s27  ;;  %s133_s29 = sand.u32 1, %s792_s14  }
  0x17   : > { %1233 = sst [smem:[#allocation13_spill]] %s1232_s26  ;;  %p40_p9 = scmp.eq.s32.totalorder %s39_s28, 0 }
  0x18   : > { %s458_s30 = sshll.u32 %s133_s29, 6  ;;  %s459_s3 = sshll.u32 %s804_s17, 4 }
  0x19   : > { %s932_s4 = scalar_select %p40_p9, %s792_s14, %s42_s23  }
  0x1a   : > { %s460_s5 = sshll.u32 %s808_s18, 5  ;;  %s137_s7 = scalar_lea.vmem [#allocation2], %s458_s30 }
  0x1b   : > { %s143_s6 = sadd.s32 %s460_s5, %s459_s3  ;;  %s146_s8 = sshll.u32 %s137_s7, 4  ;;  %s937_s8 = int_to_ptr.vmem [resolvable:$true] %s146_s8 }
  0x1c   : > { %s461_s20 = sshll.u32 %s143_s6, 6  ;;  %p948_p10 = pnand %p1222_p8, %p910_p5 }
  0x1d   : > { %s942_s26 = scalar_lea.hbm %s1216_s0, %s461_s20  ;;  %s953_s24 = scalar_lea.sflag [#allocation3], %s133_s29 }
  0x1e   : > { %s626_s28 = scalar_lea.hbm %s942_s26, 1024  ;;  %p628_p13 = pneg %p948_p10 }
  0x1f   : > { %p627_p12 = scmp.ne.s32.totalorder %s942_s26, %s626_s28  ;;  %s631_s25 = scalar_lea.hbm %s1216_s0, 4096 }
  0x20   : > { %p632_p5 = scmp.lt.u32.totalorder %s942_s26, %s1216_s0  ;;  %p633_p6 = scmp.lt.u32.totalorder %s631_s25, %s626_s28 }
  0x21   : > { %p629_p0 = pnand %p628_p13, %p627_p12  ;;  %p635_p8 = scmp.lt.u32.totalorder %s626_s28, %s942_s26 }
  0x22   : > { %p634_p9 = por %p633_p6, %p632_p5 }
  0x23   : > { %p630_p3 = pneg %p629_p0 }
  0x24   : > { %p636_p1 = por %p635_p8, %p634_p9 }
  0x26   : > { %p637_p2 = pnand %p636_p1, %p630_p3 }
  0x28   : > { %640 = shalt.err (!%p637_p2)
}
  0x29   : > { %s641_s29 = scalar_lea.vmem %s937_s8, 1024  ;;  %s814_s6 = smov [#allocation2]  }
  0x2a   : > { %p642_p12 = scmp.ne.s32.totalorder %s937_s8, %s641_s29  ;;  %s646_s7 = sshll.u32 %s814_s6, 4  ;;  %s647_s7 = int_to_ptr.vmem [resolvable:$false] %s646_s7 }
  0x2b   : > { %s648_s20 = scalar_lea.vmem %s647_s7, 2048  ;;  %p649_p11 = scmp.lt.s32.totalorder %s937_s8, %s647_s7 }
  0x2c   : > { %p644_p0 = pnand %p642_p12, %p628_p13  ;;  %p650_p5 = scmp.lt.s32.totalorder %s648_s20, %s641_s29 }
  0x2e   : > { %p645_p4 = pneg %p644_p0  ;;  %p651_p6 = por %p650_p5, %p649_p11 }
  0x30   : > { %p652_p8 = pnand %p651_p6, %p645_p4 }
  0x32   : > { %655 = shalt.err (!%p652_p8)
}
  0x33   : > { %s815_s28 = smov 64   ;;  %s816_s21 = smov 4  }
  0x34   : > { %524 = dma.hbm_to_vmem [thread:$0]  (!%p948_p10), %s942_s26, 1024, %s937_s8, %s953_s24, %s815_s28, %s815_s28, %s816_s21  }
  0x35   : > { %p172_p1 = scmp.lt.s32.totalorder %s812_s19, 5  ;;  %p1235_p2 = scmp.ge.s32.totalorder %s812_s19, 1 }
  0x36   : > { %s454_s25 = sadd.s32 4294967295, %s812_s19   ;;  %p66_p11 = scmp.eq.s32.totalorder %s925_s27, 0 }
  0x37   : > { %p984_p4 = pnand %p1235_p2, %p172_p1  ;;  %p56_p13 = scmp.eq.s32.totalorder %s454_s25, 0 }
  0x38   : > { %s68_s30 = sadd.s32 1, %s780_s11  ;;  %p1237_p3 = scmp.ne.s32.totalorder %s788_s13, %s784_s12 }
  0x39   : > { %s992_s3 = scalar_select %p66_p11, %s780_s11, %s68_s30  }
  0x3a   : > { %p997_p9 = por %p56_p13, %p1237_p3  ;;  %p75_p10 = scmp.ne.s32.totalorder %s780_s11, %s776_s10 }
  0x3b   : > { %p81_p12 = scmp.ne.s32.totalorder %s776_s10, %s772_s9  ;;  %p107_p0 = scmp.eq.s32.totalorder %s454_s25, 3 }
  0x3c   : > { %s1238_s23 = scalar_select %p997_p9, 1, 0 }
  0x3d   : > { %p1239_p5 = scmp.eq.s32.totalorder %s812_s19, 0  ;;  %s156_s26 = sand.u32 1, %s780_s11  }
  0x3e   : > { %p1008_p8 = por %p81_p12, %p56_p13  ;;  %p1241_p1 = scmp.ne.s32.totalorder %s792_s14, %s788_s13 }
  0x3f   : > { %p77_p6 = por %p75_p10, %p1239_p5  ;;  %s462_s24 = sshll.u32 %s156_s26, 1 }
  0x40   : > { %s1240_s8 = scalar_select %p1008_p8, 1, 0 }
  0x41   : > { %p1015_p2 = por %p107_p0, %p1241_p1  ;;  %s1024_s7 = scalar_lea.hbm %s1217_s1, %s460_s5 }
  0x42   : > { %s160_s9 = scalar_lea.vmem [#allocation5], %s462_s24  ;;  %p1243_p11 = scmp.lt.s32.totalorder %s812_s19, 4 }
  0x43   : > { %s1242_s27 = scalar_select %p1015_p2, 1, 0 }
  0x44   : > { %s167_s20 = sshll.u32 %s160_s9, 4  ;;  %p1028_p13 = pnand %p1243_p11, %p77_p6  ;;  %s1032_s20 = int_to_ptr.vmem [resolvable:$true] %s167_s20 }
  0x45   : > { %s157_s21 = scalar_lea.sflag [#allocation6], %s156_s26  ;;  %s656_s25 = scalar_lea.hbm %s1024_s7, 32 }
  0x46   : > { %p657_p3 = scmp.ne.s32.totalorder %s1024_s7, %s656_s25  ;;  %p658_p10 = pneg %p1028_p13 }
  0x47   : > { %s661_s24 = scalar_lea.hbm %s1217_s1, 64  ;;  %p662_p5 = scmp.lt.u32.totalorder %s1024_s7, %s1217_s1 }
  0x48   : > { %p659_p12 = pnand %p658_p10, %p657_p3  ;;  %p663_p6 = scmp.lt.u32.totalorder %s661_s24, %s656_s25 }
  0x49   : > { %p665_p11 = scmp.lt.u32.totalorder %s656_s25, %s1024_s7 }
  0x4a   : > { %p660_p0 = pneg %p659_p12  ;;  %p664_p1 = por %p663_p6, %p662_p5 }
  0x4c   : > { %p666_p7 = por %p665_p11, %p664_p1 }
  0x4e   : > { %p667_p2 = pnand %p666_p7, %p660_p0 }
  0x50   : > { %670 = shalt.err (!%p667_p2)
}
  0x51   : > { %s671_s26 = scalar_lea.vmem %s1032_s20, 32  ;;  %s817_s9 = smov [#allocation5]  }
  0x52   : > { %p672_p3 = scmp.ne.s32.totalorder %s1032_s20, %s671_s26  ;;  %s676_s5 = sshll.u32 %s817_s9, 4  ;;  %s677_s5 = int_to_ptr.vmem [resolvable:$false] %s676_s5 }
  0x53   : > { %s678_s30 = scalar_lea.vmem %s677_s5, 64  ;;  %p679_p9 = scmp.lt.s32.totalorder %s1032_s20, %s677_s5 }
  0x54   : > { %p674_p12 = pnand %p672_p3, %p658_p10  ;;  %p680_p5 = scmp.lt.s32.totalorder %s678_s30, %s671_s26 }
  0x56   : > { %p675_p8 = pneg %p674_p12  ;;  %p681_p6 = por %p680_p5, %p679_p9 }
  0x58   : > { %p682_p1 = pnand %p681_p6, %p675_p8 }
  0x5a   : > { %685 = shalt.err (!%p682_p1)
}
  0x5b   : > { %527 = dma.hbm_to_vmem [thread:$0]  (!%p1028_p13), %s1024_s7, 32, %s1032_s20, %s157_s21  }
  0x5c   : > { %176 = sbr.rel (%p984_p4) target bundleno = 139 (0x8b), region = 28  ;;  %s1062_s25 = sand.u32 (!%p984_p4), 1, %s788_s13  }
  0x5d   : > { %s465_s24 = sshll.u32 (!%p984_p4), %s1062_s25, 6  ;;  %s179_s29 = scalar_lea.sflag (!%p984_p4), [#allocation3], %s1062_s25 }
  0x5e   : > { %s1066_s6 = scalar_lea.vmem (!%p984_p4), [#allocation2], %s465_s24  ;;  %p1245_p7 = scmp.ne.s32.totalorder (!%p984_p4), %s1238_s23, 0 }
  0x63   : > { %759 = dma.done.wait (%p1245_p7), %s179_s29, 1024  }
  0x64   : > { %761 = vsyncadd (%p1245_p7), %s179_s29, 4294966272  ;;  %s187_s7 = sand.u32 1, %s776_s10   ;;  %p1246_p4 = scmp.ne.s32.totalorder %s1240_s8, 0 }
  0x65   : > { %s466_s22 = sshll.u32 %s187_s7, 1  ;;  %s188_s20 = scalar_lea.sflag [#allocation6], %s187_s7 }
  0x66   : > { %s191_s28 = scalar_lea.vmem [#allocation5], %s466_s22 }
  0x67   : > { %763 = dma.done.wait (%p1246_p4), %s188_s20, 32  }
  0x68   : > { %765 = vsyncadd (%p1246_p4), %s188_s20, 4294967264  ;;  %v477_v0 = vld [vmem:[%s1066_s6] sm:$0xff]   ;;  %v508_v4 = vld [vmem:[%s1066_s6 + $0x8] sm:$0xff]   ;;  %s467_s23 = sshll.u32 %s1062_s25, 7  ;;  %s471_s8 = sshll.u32 %s796_s15, 4 }
  0x69   : > { %v1078_v1 = vld [vmem:[%s191_s28] ss:$0 sm:$0xff]  ;;  %v478_v2 = vunpack.c.l.bf16 %v477_v0  ;;  %v479_v3 = vunpack.c.h.bf16 %v477_v0  ;;  %v509_v5 = vld [vmem:[%s1066_s6 + $0x10] sm:$0xff]   ;;  %v510_v6 = vld [vmem:[%s1066_s6 + $0x18] sm:$0xff]   ;;  %v482_v8 = vunpack.c.l.bf16 %v508_v4  ;;  %v483_v9 = vunpack.c.h.bf16 %v508_v4  ;;  %s472_s21 = sshll.u32 %s800_s16, 5  ;;  %s1110_s26 = scalar_lea.vmem [#allocation7], %s467_s23 }
  0x6a   : > { %v1083_v7 = vld [vmem:[%s191_s28 + $0x1] ss:$0 sm:$0xff]  ;;  %v486_v10 = vunpack.c.l.bf16 %v509_v5  ;;  %v487_v11 = vunpack.c.h.bf16 %v509_v5  ;;  %v490_v14 = vunpack.c.l.bf16 %v510_v6  ;;  %v491_v15 = vunpack.c.h.bf16 %v510_v6  ;;  %v512_v33 = vld [vmem:[%s1066_s6 + $0x28] sm:$0xff]   ;;  %v513_v34 = vld [vmem:[%s1066_s6 + $0x30] sm:$0xff]   ;;  %s1122_s15 = sadd.s32 %s472_s21, %s471_s8  ;;  %s341_s16 = sshll.u32 %s1110_s26, 4  ;;  %s1140_s16 = int_to_ptr.vmem [resolvable:$true] %s341_s16 }
  0x6b   : > { %v257_v12 = vsub.f32 %v478_v2, %v1078_v1  ;;  %v258_v13 = vsub.f32 %v479_v3, %v1078_v1  ;;  %v259_v16 = vsub.f32 %v482_v8, %v1078_v1  ;;  %v260_v17 = vsub.f32 %v483_v9, %v1078_v1  ;;  %v511_v28 = vld [vmem:[%s1066_s6 + $0x20] sm:$0xff]   ;;  %v514_v39 = vld [vmem:[%s1066_s6 + $0x38] sm:$0xff]   ;;  %s473_s9 = sshll.u32 %s1122_s15, 7  ;;  %s326_s29 = scalar_lea.sflag [#allocation4], %s1062_s25 }
  0x6c   : > { %v261_v18 = vsub.f32 %v486_v10, %v1078_v1  ;;  %v262_v19 = vsub.f32 %v487_v11, %v1078_v1  ;;  %v263_v22 = vsub.f32 %v490_v14, %v1078_v1  ;;  %v264_v23 = vsub.f32 %v491_v15, %v1078_v1  ;;  %s1147_s24 = scalar_lea.hbm %s1218_s2, %s473_s9  ;;  %s686_s6 = scalar_lea.vmem %s1140_s16, 2048 }
  0x6d   : > { %v277_v20 = vmul.f32 %v1083_v7, %v257_v12  ;;  %v278_v21 = vmul.f32 %v1083_v7, %v258_v13  ;;  %v279_v24 = vmul.f32 %v1083_v7, %v259_v16  ;;  %v280_v25 = vmul.f32 %v1083_v7, %v260_v17  ;;  %p687_p9 = scmp.ne.s32.totalorder %s1140_s16, %s686_s6  ;;  %p1247_p8 = scmp.ne.s32.totalorder %s1242_s27, 0 }
  0x6e   : > { %v281_v26 = vmul.f32 %v1083_v7, %v261_v18  ;;  %v282_v27 = vmul.f32 %v1083_v7, %v262_v19  ;;  %v283_v31 = vmul.f32 %v1083_v7, %v263_v22  ;;  %v284_v32 = vmul.f32 %v1083_v7, %v264_v23  ;;  %s818_s7 = smov [#allocation7]  }
  0x6f   : > { %v293_v29 = vmax.f32 %v277_v20, 0.0  ;;  %v294_v30 = vmax.f32 %v278_v21, 0.0  ;;  %v295_v35 = vmax.f32 %v279_v24, 0.0  ;;  %v296_v36 = vmax.f32 %v280_v25, 0.0  ;;  %p688_p2 = pnand %p687_p9, %p1247_p8  ;;  %s690_s22 = sshll.u32 %s818_s7, 4  ;;  %s691_s22 = int_to_ptr.vmem [resolvable:$false] %s690_s22 }
  0x70   : > { %v297_v37 = vmax.f32 %v281_v26, 0.0  ;;  %v298_v38 = vmax.f32 %v282_v27, 0.0  ;;  %v299_v40 = vmax.f32 %v283_v31, 0.0  ;;  %v300_v41 = vmax.f32 %v284_v32, 0.0  ;;  %s692_s20 = scalar_lea.vmem %s691_s22, 4096  ;;  %p693_p10 = scmp.lt.s32.totalorder %s1140_s16, %s691_s22 }
  0x71   : > { %309 = vst [vmem:[%s1110_s26] sm:$0xff] %v293_v29  ;;  %310 = vst [vmem:[%s1110_s26 + $0x8] sm:$0xff] %v294_v30  ;;  %v494_v42 = vunpack.c.l.bf16 %v511_v28  ;;  %v495_v43 = vunpack.c.h.bf16 %v511_v28  ;;  %v498_v44 = vunpack.c.l.bf16 %v512_v33  ;;  %v499_v45 = vunpack.c.h.bf16 %v512_v33  ;;  %p689_p13 = pneg %p688_p2  ;;  %p694_p0 = scmp.lt.s32.totalorder %s692_s20, %s686_s6 }
  0x72   : > { %311 = vst [vmem:[%s1110_s26 + $0x10] sm:$0xff] %v295_v35  ;;  %312 = vst [vmem:[%s1110_s26 + $0x18] sm:$0xff] %v296_v36  ;;  %v502_v46 = vunpack.c.l.bf16 %v513_v34  ;;  %v503_v47 = vunpack.c.h.bf16 %v513_v34  ;;  %v506_v50 = vunpack.c.l.bf16 %v514_v39  ;;  %v507_v51 = vunpack.c.h.bf16 %v514_v39 }
  0x73   : > { %313 = vst [vmem:[%s1110_s26 + $0x20] sm:$0xff] %v297_v37  ;;  %314 = vst [vmem:[%s1110_s26 + $0x28] sm:$0xff] %v298_v38  ;;  %v265_v48 = vsub.f32 %v494_v42, %v1078_v1  ;;  %v266_v49 = vsub.f32 %v495_v43, %v1078_v1  ;;  %v267_v52 = vsub.f32 %v498_v44, %v1078_v1  ;;  %p695_p11 = por %p694_p0, %p693_p10 }
  0x74   : > { %315 = vst [vmem:[%s1110_s26 + $0x30] sm:$0xff] %v299_v40  ;;  %316 = vst [vmem:[%s1110_s26 + $0x38] sm:$0xff] %v300_v41  ;;  %v268_v53 = vsub.f32 %v499_v45, %v1078_v1  ;;  %v269_v54 = vsub.f32 %v502_v46, %v1078_v1  ;;  %v270_v55 = vsub.f32 %v503_v47, %v1078_v1 }
  0x75   : > { %v285_v56 = vmul.f32 %v1083_v7, %v265_v48  ;;  %v286_v57 = vmul.f32 %v1083_v7, %v266_v49  ;;  %v271_v58 = vsub.f32 %v506_v50, %v1078_v1  ;;  %v272_v59 = vsub.f32 %v507_v51, %v1078_v1  ;;  %p696_p3 = pnand %p695_p11, %p689_p13 }
  0x76   : > { %v287_v60 = vmul.f32 %v1083_v7, %v267_v52  ;;  %v288_v61 = vmul.f32 %v1083_v7, %v268_v53  ;;  %v289_v62 = vmul.f32 %v1083_v7, %v269_v54  ;;  %v290_v63 = vmul.f32 %v1083_v7, %v270_v55 }
  0x77   : > { %v301_v0 = vmax.f32 %v285_v56, 0.0  ;;  %v302_v2 = vmax.f32 %v286_v57, 0.0  ;;  %v291_v1 = vmul.f32 %v1083_v7, %v271_v58  ;;  %v292_v3 = vmul.f32 %v1083_v7, %v272_v59 }
  0x78   : > { %v303_v4 = vmax.f32 %v287_v60, 0.0  ;;  %v304_v5 = vmax.f32 %v288_v61, 0.0  ;;  %v305_v6 = vmax.f32 %v289_v62, 0.0  ;;  %v306_v8 = vmax.f32 %v290_v63, 0.0 }
  0x79   : > { %317 = vst [vmem:[%s1110_s26 + $0x40] sm:$0xff] %v301_v0  ;;  %318 = vst [vmem:[%s1110_s26 + $0x48] sm:$0xff] %v302_v2  ;;  %v307_v9 = vmax.f32 %v291_v1, 0.0  ;;  %v308_v10 = vmax.f32 %v292_v3, 0.0 }
  0x7a   : > { %319 = vst [vmem:[%s1110_s26 + $0x50] sm:$0xff] %v303_v4  ;;  %320 = vst [vmem:[%s1110_s26 + $0x58] sm:$0xff] %v304_v5 }
  0x7b   : > { %321 = vst [vmem:[%s1110_s26 + $0x60] sm:$0xff] %v305_v6  ;;  %322 = vst [vmem:[%s1110_s26 + $0x68] sm:$0xff] %v306_v8 }
  0x7c   : > { %323 = vst [vmem:[%s1110_s26 + $0x70] sm:$0xff] %v307_v9  ;;  %324 = vst [vmem:[%s1110_s26 + $0x78] sm:$0xff] %v308_v10 }
  0x7d   : > { %699 = shalt.err (!%p696_p3)
}
  0x7e   : > { %s700_s28 = scalar_lea.hbm %s1147_s24, 2048  ;;  %s704_s21 = scalar_lea.hbm %s1218_s2, 8192 }
  0x7f   : > { %p701_p12 = scmp.ne.s32.totalorder %s1147_s24, %s700_s28  ;;  %p705_p1 = scmp.lt.u32.totalorder %s1147_s24, %s1218_s2 }
  0x80   : > { %p706_p7 = scmp.lt.u32.totalorder %s704_s21, %s700_s28  ;;  %p708_p9 = scmp.lt.u32.totalorder %s700_s28, %s1147_s24 }
  0x81   : > { %p702_p5 = pnand %p701_p12, %p1247_p8 }
  0x82   : > { %p707_p4 = por %p706_p7, %p705_p1 }
  0x83   : > { %p703_p6 = pneg %p702_p5 }
  0x84   : > { %p709_p2 = por %p708_p9, %p707_p4 }
  0x86   : > { %p710_p13 = pnand %p709_p2, %p703_p6 }
  0x88   : > { %713 = shalt.err (!%p710_p13)
}
  0x89   : > { %s819_s9 = smov 128   ;;  %s820_s5 = smov 8  }
  0x8a   : > { %519 = dma.vmem_to_hbm [thread:$0]  (%p1247_p8), %s1140_s16, 2048, %s1147_s24, %s326_s29, %s819_s9, %s819_s9, %s820_s5  }
  0x8b PF: > { %s1248_s30 = sld [smem:[#allocation13_spill]]  ;;  %p533_p10 = scmp.ge.s32.totalorder %s812_s19, 2 }
  0x8c   : > { %s356_s6 = sand.u32 1, %s784_s12  }
  0x8d   : > { %s357_s7 = scalar_lea.sflag [#allocation4], %s356_s6 }
  0x91   : > { %p1249_p0 = scmp.ne.s32.totalorder %s1248_s30, 0 }
  0x93   : > { %p529_p11 = pnand %p533_p10, %p1249_p0 }
  0x95   : > { %767 = dma.done.wait (!%p529_p11), %s357_s7, 2048  }
  0x96   : > { %769 = vsyncadd (!%p529_p11), %s357_s7, 4294965248  ;;  %s21_s19 = sadd.s32 1, %s812_s19   ;;  %s1250_s27 = sld [smem:[#allocation11_spill]] }
  0x97   : > { %p18_p3 = scmp.ge.s32.totalorder %s21_s19, 6   ;;  %s1251_s25 = sld [smem:[#allocation12_spill]] }
  0x98   : > { %s1252_s9 = smov %s776_s10  ;;  %s1253_s10 = smov %s780_s11 }
  0x99   : > { %s1254_s11 = smov %s992_s3  ;;  %s1255_s12 = smov %s788_s13 }
  0x9a   : > { %s1256_s13 = smov %s792_s14  ;;  %s1257_s14 = smov %s932_s4 }
  0x9b   : > { %s1258_s15 = smov %s804_s17  ;;  %s1259_s16 = smov %s808_s18 }
  0x9c   : > { %s1260_s17 = smov %s1250_s27  ;;  %20 = sbr.rel (!%p18_p3) target bundleno = 11 (0xb), region = 86 }
  0x9d   : > { %s1261_s18 = smov %s1251_s25 }
  0xa3   :  { %362 = vsyncpa [#allocation3], 1 }
  0xa4   :  { %364 = vsyncpa [#allocation3 + $0x1], 1 }
  0xa5   :  { %365 = vsyncpa [#allocation6], 1 }
  0xa6   :  { %367 = vsyncpa [#allocation6 + $0x1], 1 }
  0xa7   :  { %368 = vsyncpa [#allocation4], 1 }
  0xa8   :  { %370 = vsyncpa [#allocation4 + $0x1], 1 }

</bundles_post_ra>
